<compile_context>
chip_gen: v7x
topology: tpu7x:2x2x1
jax: 0.10.0
libtpu: 0.0.40
codegen_flags: <defaults>
</compile_context>

<pallas_src>
import functools

import jax
import jax.numpy as jnp
from jax import lax
from jax.experimental import pallas as pl
from jax.experimental.pallas import tpu as pltpu

_LANE = 128


def _round_up(v, m):
    return (v + m - 1) // m * m


def _mpnet_kernel(xr_ref, xi_ref, wr_ref, wi_ref, wsub_ref, wtr_ref, wti_ref,
                  rr_ref, ri_ref, *, k, n_atoms, dot_dtype):
    """Runs all k matching-pursuit iterations for one (tile_m, N_pad) row tile.

    Inputs (VMEM):
      xr/xi     : (tile_m, N_pad)   real / imag of x
      wr/wi     : (N_pad, A_pad)    real / imag of W          (loop-invariant)
      wsub      : (N_pad, A_pad)    Wr - Wi  (Karatsuba operand for R@conj(W))
      wtr/wti   : (A_pad, N_pad)    real / imag of W.T (host-transposed once)
    Outputs (VMEM):
      rr/ri     : residual (real / imag), f32
    """
    xr = xr_ref[...]
    xi = xi_ref[...]
    wr = wr_ref[...]
    wi = wi_ref[...]
    w_sub = wsub_ref[...]
    wtr = wtr_ref[...]
    wti = wti_ref[...]

    dn = (((1,), (0,)), ((), ()))   # standard (m, p) x (p, q) contraction

    def mm(a, b):
        return lax.dot_general(a.astype(dot_dtype), b, dn,
                               preferred_element_type=jnp.float32)

    def body(_, carry):
        rr, ri = carry

        # ---- C = residual @ conj(W)   (conj(W) = Wr - i*Wi), 3 real matmuls.
        t1 = mm(rr, wr)
        t2 = mm(ri, wi)
        t3 = mm(rr + ri, w_sub)
        cr = t1 + t2               # rr@wr + ri@wi
        ci = t3 - t1 + t2          # ri@wr - rr@wi

        # ---- keep_k_max with k=1: first max-|.| entry per row (matches
        #      torch.topk / argmax tie-breaking). Padded atoms have zero
        #      magnitude -> never selected. Squared magnitude is fine here
        #      (no overflow at realistic scales).
        mag = cr * cr + ci * ci
        mmax = jnp.max(mag, axis=-1, keepdims=True)
        iota = lax.broadcasted_iota(jnp.int32, mag.shape, 1)
        idx = jnp.min(jnp.where(mag == mmax, iota, jnp.int32(n_atoms)),
                      axis=-1, keepdims=True)
        selm = (iota == idx).astype(jnp.float32)   # one-hot, real

        # ---- z is 1-sparse per row:  z @ W.T = coef * W.T[idx, :].
        # Extract the complex coefficient with a masked sum (XLU reduce) and
        # "gather" the W.T row with a one-hot REAL matmul: 2 MXU matmuls
        # instead of 3 (Karatsuba) / 4 (naive) for the dense complex z @ W.T.
        coef_r = jnp.sum(cr * selm, axis=-1, keepdims=True)
        coef_i = jnp.sum(ci * selm, axis=-1, keepdims=True)
        row_r = mm(selm, wtr)
        row_i = mm(selm, wti)
        dr = coef_r * row_r - coef_i * row_i
        di = coef_r * row_i + coef_i * row_r

        return rr - dr, ri - di

    # k is a static Python int: unroll (fully for small k) so the LLO
    # scheduler can overlap MXU drain of iteration i with VPU work of i+1.
    unroll = True if k <= 8 else 8
    rr, ri = lax.fori_loop(0, k, body, (xr, xi), unroll=unroll)

    rr_ref[...] = rr
    ri_ref[...] = ri


def mpnet_forward(x_r, x_i, w_r, w_i, k, *, tile_m=None,
                  dot_dtype=jnp.float32):
    """Returns (residual, x_hat) as (real, imag) float32 pairs.

    dot_dtype=jnp.bfloat16 enables bf16 MXU operands (f32 accumulation) for
    roughly 2-3x matmul throughput and halved dictionary DMA on v5e, v6e and
    v7x alike (the MXU is bf16-native on all of them). The default stays f32
    because the per-row argmax selection is discrete and can flip for
    near-tied atoms under bf16 rounding.
    """
    n, N = x_r.shape
    Nw, A = w_r.shape
    assert Nw == N and x_i.shape == x_r.shape and w_i.shape == w_r.shape

    # ---- lane-pad N and A to multiples of 128: zero rows/cols of W and zero
    # columns of x are inert (zero magnitude -> never selected; contribute 0
    # to every matmul), and lane-dense blocks avoid masked vst / partial MXU
    # tiles.
    N_pad = _round_up(N, _LANE)
    A_pad = _round_up(A, _LANE)
    if N_pad != N:
        x_r = jnp.pad(x_r, ((0, 0), (0, N_pad - N)))
        x_i = jnp.pad(x_i, ((0, 0), (0, N_pad - N)))
    if N_pad != N or A_pad != A:
        w_r = jnp.pad(w_r, ((0, N_pad - N), (0, A_pad - A)))
        w_i = jnp.pad(w_i, ((0, N_pad - N), (0, A_pad - A)))

    # ---- hoist casts / transpose / Karatsuba operand out of the kernel.
    wr_d = w_r.astype(dot_dtype)
    wi_d = w_i.astype(dot_dtype)
    wsub_d = (w_r - w_i).astype(dot_dtype)   # for C = R @ conj(W)
    wtr_d = wr_d.T                           # (A_pad, N_pad)
    wti_d = wi_d.T

    # ---- generation-aware VMEM budget.
    try:
        vmem_capacity = int(pltpu.get_tpu_info().vmem_capacity_bytes)
    except Exception:
        vmem_capacity = 64 * 1024 * 1024     # conservative (v7x per-core)
    vmem_limit = min(vmem_capacity * 3 // 4, 100 * 1024 * 1024)

    w_itemsize = jnp.dtype(dot_dtype).itemsize
    # Dictionary footprint: 5 constant-index arrays. The budget conservatively
    # assumes the default 2 pipeline buffers; single-buffering them only adds
    # headroom on top.
    dict_bytes = 5 * N_pad * A_pad * w_itemsize * 2
    headroom = 6 * 1024 * 1024               # Mosaic internal scratch etc.
    # f32 per-row footprint: x (2 arrays x 2 bufs) + residual out (2 x 2 bufs)
    # + ~8 N-wide and ~8 A-wide live temporaries inside the k-loop body.
    per_row_bytes = 4 * (16 * N_pad + 8 * A_pad)
    budget = max(vmem_limit - dict_bytes - headroom, per_row_bytes * 8)
    # TODO(synk): if the dictionary alone exceeds the VMEM limit this will not
    #             compile; that case needs an A-tiled ("arbitrary") grid axis
    #             with an online running max/argmax.

    if tile_m is None:
        tile_m = budget // per_row_bytes
    if n > 8:
        # >= 2 row tiles so ("parallel",) can shard across v7x's two TCs.
        tile_m = min(tile_m, _round_up(pl.cdiv(n, 2), 8))
    tile_m = min(tile_m, 2048, _round_up(n, 8))
    tile_m = max(8, (tile_m // 8) * 8)

    # ---- pad the sample dim so tile_m divides it exactly (rows independent;
    # zero rows stay zero through the iteration and are sliced off below).
    n_pad = _round_up(n, tile_m)
    if n_pad != n:
        pad = ((0, n_pad - n), (0, 0))
        x_r = jnp.pad(x_r, pad)
        x_i = jnp.pad(x_i, pad)

    kernel = functools.partial(_mpnet_kernel, k=int(k), n_atoms=int(A_pad),
                               dot_dtype=dot_dtype)

    grid = (n_pad // tile_m,)
    x_spec = pl.BlockSpec((tile_m, N_pad), lambda i: (i, 0))
    out_spec = pl.BlockSpec((tile_m, N_pad), lambda i: (i, 0))

    def _dict_specs(single_buffer):
        kw = dict(pipeline_mode=pl.Buffered(1)) if single_buffer else {}
        w_spec = pl.BlockSpec((N_pad, A_pad), lambda i: (0, 0), **kw)
        wt_spec = pl.BlockSpec((A_pad, N_pad), lambda i: (0, 0), **kw)
        return [w_spec, w_spec, w_spec, wt_spec, wt_spec]

    def _run(single_buffer):
        return pl.pallas_call(
            kernel,
            grid=grid,
            in_specs=[x_spec, x_spec] + _dict_specs(single_buffer),
            out_specs=[out_spec, out_spec],
            out_shape=[jax.ShapeDtypeStruct((n_pad, N_pad), jnp.float32)
                       for _ in range(2)],
            compiler_params=pltpu.CompilerParams(
                dimension_semantics=("parallel",),   # megacore-shard row tiles
                vmem_limit_bytes=int(vmem_limit)),
        )(x_r, x_i, wr_d, wi_d, wsub_d, wtr_d, wti_d)

    try:
        # Single-buffer the constant-index dictionary inputs (never re-fetched).
        rr, ri = _run(single_buffer=True)
        jax.block_until_ready((rr, ri))
    except Exception:
        # pl.Buffered(1) not accepted on this jax version: fall back to the
        # default double-buffered dictionary (budget above already assumed it).
        rr, ri = _run(single_buffer=False)

    rr = rr[:n, :N]
    ri = ri[:n, :N]
    # x_hat = x - residual: trivial XLA subtract outside the kernel (halves
    # the kernel's HBM store traffic).
    xhr = x_r[:n, :N] - rr
    xhi = x_i[:n, :N] - ri
    return (rr, ri), (xhr, xhi)


def _reference(x_r, x_i, w_r, w_i, k):
    """Pure-JAX complex64 reference of the same forward pass."""
    x = x_r.astype(jnp.complex64) + 1j * x_i.astype(jnp.complex64)
    w = w_r.astype(jnp.complex64) + 1j * w_i.astype(jnp.complex64)
    residual = x
    for _ in range(k):
        c = residual @ jnp.conj(w)
        mag = jnp.abs(c)
        idx = jnp.argmax(mag, axis=-1)
        mask = jax.nn.one_hot(idx, c.shape[-1], dtype=jnp.float32) > 0
        z = jnp.where(mask, c, 0.0 + 0.0j)
        residual = residual - z @ w.T
    x_hat = x - residual
    return residual, x_hat


if __name__ == "__main__":
    key = jax.random.PRNGKey(0)
    n_samples, N, A, k = 8, 16, 32, 3

    k1, k2, k3, k4 = jax.random.split(key, 4)
    x_r = jax.random.normal(k1, (n_samples, N), dtype=jnp.float32)
    x_i = jax.random.normal(k2, (n_samples, N), dtype=jnp.float32)
    w_r = jax.random.normal(k3, (N, A), dtype=jnp.float32) / jnp.sqrt(N)
    w_i = jax.random.normal(k4, (N, A), dtype=jnp.float32) / jnp.sqrt(N)

    (rr, ri), (xhr, xhi) = mpnet_forward(x_r, x_i, w_r, w_i, k)
    jax.block_until_ready((rr, ri, xhr, xhi))

    # sanity check against a pure-JAX complex reference
    res_ref, xhat_ref = _reference(x_r, x_i, w_r, w_i, k)
    assert jnp.allclose(rr, res_ref.real, atol=1e-3, rtol=1e-3)
    assert jnp.allclose(ri, res_ref.imag, atol=1e-3, rtol=1e-3)
    assert jnp.allclose(xhr, xhat_ref.real, atol=1e-3, rtol=1e-3)
    assert jnp.allclose(xhi, xhat_ref.imag, atol=1e-3, rtol=1e-3)

    print("KERNEL_OK")
</pallas_src>

<mosaic_0001>
module attributes {stable_mosaic.version = 11 : i64} {
  func.func @_mpnet_kernel(%arg0: i32, %arg1: memref<8x128xf32, #tpu.memory_space<vmem>>, %arg2: memref<8x128xf32, #tpu.memory_space<vmem>>, %arg3: memref<128x128xf32, #tpu.memory_space<vmem>>, %arg4: memref<128x128xf32, #tpu.memory_space<vmem>>, %arg5: memref<128x128xf32, #tpu.memory_space<vmem>>, %arg6: memref<128x128xf32, #tpu.memory_space<vmem>>, %arg7: memref<128x128xf32, #tpu.memory_space<vmem>>, %arg8: memref<8x128xf32, #tpu.memory_space<vmem>>, %arg9: memref<8x128xf32, #tpu.memory_space<vmem>>) attributes {dimension_semantics = [#tpu.dimension_semantics<parallel>], iteration_bounds = array<i64: 1>, scalar_prefetch = 0 : i64, scratch_operands = 0 : i64, tpu.core_type = #tpu.core_type<tc>, window_params = [{transform_indices = @transform_0, window_bounds = array<i64: 8, 128>}, {transform_indices = @transform_1, window_bounds = array<i64: 8, 128>}, {pipeline_mode = #tpu.pipeline_mode<synchronous>, transform_indices = @transform_2, window_bounds = array<i64: 128, 128>}, {pipeline_mode = #tpu.pipeline_mode<synchronous>, transform_indices = @transform_3, window_bounds = array<i64: 128, 128>}, {pipeline_mode = #tpu.pipeline_mode<synchronous>, transform_indices = @transform_4, window_bounds = array<i64: 128, 128>}, {pipeline_mode = #tpu.pipeline_mode<synchronous>, transform_indices = @transform_5, window_bounds = array<i64: 128, 128>}, {pipeline_mode = #tpu.pipeline_mode<synchronous>, transform_indices = @transform_6, window_bounds = array<i64: 128, 128>}, {transform_indices = @transform_7, window_bounds = array<i64: 8, 128>}, {transform_indices = @transform_8, window_bounds = array<i64: 8, 128>}]} {
    %c0 = arith.constant 0 : index
    %c0_0 = arith.constant 0 : index
    %0 = vector.load %arg1[%c0, %c0_0] : memref<8x128xf32, #tpu.memory_space<vmem>>, vector<8x128xf32>
    %c0_1 = arith.constant 0 : index
    %c0_2 = arith.constant 0 : index
    %1 = vector.load %arg2[%c0_1, %c0_2] : memref<8x128xf32, #tpu.memory_space<vmem>>, vector<8x128xf32>
    %c0_3 = arith.constant 0 : index
    %c0_4 = arith.constant 0 : index
    %2 = vector.load %arg3[%c0_3, %c0_4] : memref<128x128xf32, #tpu.memory_space<vmem>>, vector<128x128xf32>
    %c0_5 = arith.constant 0 : index
    %c0_6 = arith.constant 0 : index
    %3 = vector.load %arg4[%c0_5, %c0_6] : memref<128x128xf32, #tpu.memory_space<vmem>>, vector<128x128xf32>
    %c0_7 = arith.constant 0 : index
    %c0_8 = arith.constant 0 : index
    %4 = vector.load %arg5[%c0_7, %c0_8] : memref<128x128xf32, #tpu.memory_space<vmem>>, vector<128x128xf32>
    %c0_9 = arith.constant 0 : index
    %c0_10 = arith.constant 0 : index
    %5 = vector.load %arg6[%c0_9, %c0_10] : memref<128x128xf32, #tpu.memory_space<vmem>>, vector<128x128xf32>
    %c0_11 = arith.constant 0 : index
    %c0_12 = arith.constant 0 : index
    %6 = vector.load %arg7[%c0_11, %c0_12] : memref<128x128xf32, #tpu.memory_space<vmem>>, vector<128x128xf32>
    %c0_i32 = arith.constant 0 : i32
    %cst = arith.constant dense<0.000000e+00> : vector<8x128xf32>
    %7 = tpu.matmul %0, %2, %cst {dimension_numbers = #tpu.dot_dimension_numbers<[1], [0], [0], [1], [0, 0, 1, 1], [], []>} : vector<8x128xf32>, vector<128x128xf32>, vector<8x128xf32> -> vector<8x128xf32>
    %cst_13 = arith.constant dense<0.000000e+00> : vector<8x128xf32>
    %8 = tpu.matmul %1, %3, %cst_13 {dimension_numbers = #tpu.dot_dimension_numbers<[1], [0], [0], [1], [0, 0, 1, 1], [], []>} : vector<8x128xf32>, vector<128x128xf32>, vector<8x128xf32> -> vector<8x128xf32>
    %9 = arith.addf %0, %1 : vector<8x128xf32>
    %cst_14 = arith.constant dense<0.000000e+00> : vector<8x128xf32>
    %10 = tpu.matmul %9, %4, %cst_14 {dimension_numbers = #tpu.dot_dimension_numbers<[1], [0], [0], [1], [0, 0, 1, 1], [], []>} : vector<8x128xf32>, vector<128x128xf32>, vector<8x128xf32> -> vector<8x128xf32>
    %11 = arith.addf %7, %8 : vector<8x128xf32>
    %12 = arith.subf %10, %7 : vector<8x128xf32>
    %13 = arith.addf %12, %8 : vector<8x128xf32>
    %14 = arith.mulf %11, %11 : vector<8x128xf32>
    %15 = arith.mulf %13, %13 : vector<8x128xf32>
    %16 = arith.addf %14, %15 : vector<8x128xf32>
    %cst_15 = arith.constant dense<0xFF800000> : vector<8xf32>
    %17 = vector.multi_reduction <maximumf>, %16, %cst_15 [1] : vector<8x128xf32> to vector<8xf32>
    %18 = vector.shape_cast %17 : vector<8xf32> to vector<8x1xf32>
    %19 = tpu.iota {dimensions = array<i32: 1>} : vector<8x128xi32>
    %20 = vector.broadcast %18 : vector<8x1xf32> to vector<8x128xf32>
    %21 = arith.cmpf oeq, %16, %20 : vector<8x128xf32>
    %c128_i32 = arith.constant 128 : i32
    %22 = vector.broadcast %c128_i32 : i32 to vector<8x128xi32>
    %23 = arith.select %21, %19, %22 : vector<8x128xi1>, vector<8x128xi32>
    %cst_16 = arith.constant dense<2147483647> : vector<8xi32>
    %24 = vector.multi_reduction <minsi>, %23, %cst_16 [1] : vector<8x128xi32> to vector<8xi32>
    %25 = vector.shape_cast %24 : vector<8xi32> to vector<8x1xi32>
    %26 = vector.broadcast %25 : vector<8x1xi32> to vector<8x128xi32>
    %27 = arith.cmpi eq, %19, %26 : vector<8x128xi32>
    %28 = arith.extui %27 : vector<8x128xi1> to vector<8x128xi32>
    %29 = arith.sitofp %28 : vector<8x128xi32> to vector<8x128xf32>
    %30 = arith.mulf %11, %29 : vector<8x128xf32>
    %cst_17 = arith.constant dense<0.000000e+00> : vector<8xf32>
    %31 = vector.multi_reduction <add>, %30, %cst_17 [1] : vector<8x128xf32> to vector<8xf32>
    %32 = vector.shape_cast %31 : vector<8xf32> to vector<8x1xf32>
    %33 = arith.mulf %13, %29 : vector<8x128xf32>
    %cst_18 = arith.constant dense<0.000000e+00> : vector<8xf32>
    %34 = vector.multi_reduction <add>, %33, %cst_18 [1] : vector<8x128xf32> to vector<8xf32>
    %35 = vector.shape_cast %34 : vector<8xf32> to vector<8x1xf32>
    %cst_19 = arith.constant dense<0.000000e+00> : vector<8x128xf32>
    %36 = tpu.matmul %29, %5, %cst_19 {dimension_numbers = #tpu.dot_dimension_numbers<[1], [0], [0], [1], [0, 0, 1, 1], [], []>} : vector<8x128xf32>, vector<128x128xf32>, vector<8x128xf32> -> vector<8x128xf32>
    %cst_20 = arith.constant dense<0.000000e+00> : vector<8x128xf32>
    %37 = tpu.matmul %29, %6, %cst_20 {dimension_numbers = #tpu.dot_dimension_numbers<[1], [0], [0], [1], [0, 0, 1, 1], [], []>} : vector<8x128xf32>, vector<128x128xf32>, vector<8x128xf32> -> vector<8x128xf32>
    %38 = vector.broadcast %32 : vector<8x1xf32> to vector<8x128xf32>
    %39 = arith.mulf %38, %36 : vector<8x128xf32>
    %40 = vector.broadcast %35 : vector<8x1xf32> to vector<8x128xf32>
    %41 = arith.mulf %40, %37 : vector<8x128xf32>
    %42 = arith.subf %39, %41 : vector<8x128xf32>
    %43 = vector.broadcast %32 : vector<8x1xf32> to vector<8x128xf32>
    %44 = arith.mulf %43, %37 : vector<8x128xf32>
    %45 = vector.broadcast %35 : vector<8x1xf32> to vector<8x128xf32>
    %46 = arith.mulf %45, %36 : vector<8x128xf32>
    %47 = arith.addf %44, %46 : vector<8x128xf32>
    %48 = arith.subf %0, %42 : vector<8x128xf32>
    %49 = arith.subf %1, %47 : vector<8x128xf32>
    %c1_i32 = arith.constant 1 : i32
    %cst_21 = arith.constant dense<0.000000e+00> : vector<8x128xf32>
    %50 = tpu.matmul %48, %2, %cst_21 {dimension_numbers = #tpu.dot_dimension_numbers<[1], [0], [0], [1], [0, 0, 1, 1], [], []>} : vector<8x128xf32>, vector<128x128xf32>, vector<8x128xf32> -> vector<8x128xf32>
    %cst_22 = arith.constant dense<0.000000e+00> : vector<8x128xf32>
    %51 = tpu.matmul %49, %3, %cst_22 {dimension_numbers = #tpu.dot_dimension_numbers<[1], [0], [0], [1], [0, 0, 1, 1], [], []>} : vector<8x128xf32>, vector<128x128xf32>, vector<8x128xf32> -> vector<8x128xf32>
    %52 = arith.addf %48, %49 : vector<8x128xf32>
    %cst_23 = arith.constant dense<0.000000e+00> : vector<8x128xf32>
    %53 = tpu.matmul %52, %4, %cst_23 {dimension_numbers = #tpu.dot_dimension_numbers<[1], [0], [0], [1], [0, 0, 1, 1], [], []>} : vector<8x128xf32>, vector<128x128xf32>, vector<8x128xf32> -> vector<8x128xf32>
    %54 = arith.addf %50, %51 : vector<8x128xf32>
    %55 = arith.subf %53, %50 : vector<8x128xf32>
    %56 = arith.addf %55, %51 : vector<8x128xf32>
    %57 = arith.mulf %54, %54 : vector<8x128xf32>
    %58 = arith.mulf %56, %56 : vector<8x128xf32>
    %59 = arith.addf %57, %58 : vector<8x128xf32>
    %cst_24 = arith.constant dense<0xFF800000> : vector<8xf32>
    %60 = vector.multi_reduction <maximumf>, %59, %cst_24 [1] : vector<8x128xf32> to vector<8xf32>
    %61 = vector.shape_cast %60 : vector<8xf32> to vector<8x1xf32>
    %62 = tpu.iota {dimensions = array<i32: 1>} : vector<8x128xi32>
    %63 = vector.broadcast %61 : vector<8x1xf32> to vector<8x128xf32>
    %64 = arith.cmpf oeq, %59, %63 : vector<8x128xf32>
    %c128_i32_25 = arith.constant 128 : i32
    %65 = vector.broadcast %c128_i32_25 : i32 to vector<8x128xi32>
    %66 = arith.select %64, %62, %65 : vector<8x128xi1>, vector<8x128xi32>
    %cst_26 = arith.constant dense<2147483647> : vector<8xi32>
    %67 = vector.multi_reduction <minsi>, %66, %cst_26 [1] : vector<8x128xi32> to vector<8xi32>
    %68 = vector.shape_cast %67 : vector<8xi32> to vector<8x1xi32>
    %69 = vector.broadcast %68 : vector<8x1xi32> to vector<8x128xi32>
    %70 = arith.cmpi eq, %62, %69 : vector<8x128xi32>
    %71 = arith.extui %70 : vector<8x128xi1> to vector<8x128xi32>
    %72 = arith.sitofp %71 : vector<8x128xi32> to vector<8x128xf32>
    %73 = arith.mulf %54, %72 : vector<8x128xf32>
    %cst_27 = arith.constant dense<0.000000e+00> : vector<8xf32>
    %74 = vector.multi_reduction <add>, %73, %cst_27 [1] : vector<8x128xf32> to vector<8xf32>
    %75 = vector.shape_cast %74 : vector<8xf32> to vector<8x1xf32>
    %76 = arith.mulf %56, %72 : vector<8x128xf32>
    %cst_28 = arith.constant dense<0.000000e+00> : vector<8xf32>
    %77 = vector.multi_reduction <add>, %76, %cst_28 [1] : vector<8x128xf32> to vector<8xf32>
    %78 = vector.shape_cast %77 : vector<8xf32> to vector<8x1xf32>
    %cst_29 = arith.constant dense<0.000000e+00> : vector<8x128xf32>
    %79 = tpu.matmul %72, %5, %cst_29 {dimension_numbers = #tpu.dot_dimension_numbers<[1], [0], [0], [1], [0, 0, 1, 1], [], []>} : vector<8x128xf32>, vector<128x128xf32>, vector<8x128xf32> -> vector<8x128xf32>
    %cst_30 = arith.constant dense<0.000000e+00> : vector<8x128xf32>
    %80 = tpu.matmul %72, %6, %cst_30 {dimension_numbers = #tpu.dot_dimension_numbers<[1], [0], [0], [1], [0, 0, 1, 1], [], []>} : vector<8x128xf32>, vector<128x128xf32>, vector<8x128xf32> -> vector<8x128xf32>
    %81 = vector.broadcast %75 : vector<8x1xf32> to vector<8x128xf32>
    %82 = arith.mulf %81, %79 : vector<8x128xf32>
    %83 = vector.broadcast %78 : vector<8x1xf32> to vector<8x128xf32>
    %84 = arith.mulf %83, %80 : vector<8x128xf32>
    %85 = arith.subf %82, %84 : vector<8x128xf32>
    %86 = vector.broadcast %75 : vector<8x1xf32> to vector<8x128xf32>
    %87 = arith.mulf %86, %80 : vector<8x128xf32>
    %88 = vector.broadcast %78 : vector<8x1xf32> to vector<8x128xf32>
    %89 = arith.mulf %88, %79 : vector<8x128xf32>
    %90 = arith.addf %87, %89 : vector<8x128xf32>
    %91 = arith.subf %48, %85 : vector<8x128xf32>
    %92 = arith.subf %49, %90 : vector<8x128xf32>
    %c2_i32 = arith.constant 2 : i32
    %cst_31 = arith.constant dense<0.000000e+00> : vector<8x128xf32>
    %93 = tpu.matmul %91, %2, %cst_31 {dimension_numbers = #tpu.dot_dimension_numbers<[1], [0], [0], [1], [0, 0, 1, 1], [], []>} : vector<8x128xf32>, vector<128x128xf32>, vector<8x128xf32> -> vector<8x128xf32>
    %cst_32 = arith.constant dense<0.000000e+00> : vector<8x128xf32>
    %94 = tpu.matmul %92, %3, %cst_32 {dimension_numbers = #tpu.dot_dimension_numbers<[1], [0], [0], [1], [0, 0, 1, 1], [], []>} : vector<8x128xf32>, vector<128x128xf32>, vector<8x128xf32> -> vector<8x128xf32>
    %95 = arith.addf %91, %92 : vector<8x128xf32>
    %cst_33 = arith.constant dense<0.000000e+00> : vector<8x128xf32>
    %96 = tpu.matmul %95, %4, %cst_33 {dimension_numbers = #tpu.dot_dimension_numbers<[1], [0], [0], [1], [0, 0, 1, 1], [], []>} : vector<8x128xf32>, vector<128x128xf32>, vector<8x128xf32> -> vector<8x128xf32>
    %97 = arith.addf %93, %94 : vector<8x128xf32>
    %98 = arith.subf %96, %93 : vector<8x128xf32>
    %99 = arith.addf %98, %94 : vector<8x128xf32>
    %100 = arith.mulf %97, %97 : vector<8x128xf32>
    %101 = arith.mulf %99, %99 : vector<8x128xf32>
    %102 = arith.addf %100, %101 : vector<8x128xf32>
    %cst_34 = arith.constant dense<0xFF800000> : vector<8xf32>
    %103 = vector.multi_reduction <maximumf>, %102, %cst_34 [1] : vector<8x128xf32> to vector<8xf32>
    %104 = vector.shape_cast %103 : vector<8xf32> to vector<8x1xf32>
    %105 = tpu.iota {dimensions = array<i32: 1>} : vector<8x128xi32>
    %106 = vector.broadcast %104 : vector<8x1xf32> to vector<8x128xf32>
    %107 = arith.cmpf oeq, %102, %106 : vector<8x128xf32>
    %c128_i32_35 = arith.constant 128 : i32
    %108 = vector.broadcast %c128_i32_35 : i32 to vector<8x128xi32>
    %109 = arith.select %107, %105, %108 : vector<8x128xi1>, vector<8x128xi32>
    %cst_36 = arith.constant dense<2147483647> : vector<8xi32>
    %110 = vector.multi_reduction <minsi>, %109, %cst_36 [1] : vector<8x128xi32> to vector<8xi32>
    %111 = vector.shape_cast %110 : vector<8xi32> to vector<8x1xi32>
    %112 = vector.broadcast %111 : vector<8x1xi32> to vector<8x128xi32>
    %113 = arith.cmpi eq, %105, %112 : vector<8x128xi32>
    %114 = arith.extui %113 : vector<8x128xi1> to vector<8x128xi32>
    %115 = arith.sitofp %114 : vector<8x128xi32> to vector<8x128xf32>
    %116 = arith.mulf %97, %115 : vector<8x128xf32>
    %cst_37 = arith.constant dense<0.000000e+00> : vector<8xf32>
    %117 = vector.multi_reduction <add>, %116, %cst_37 [1] : vector<8x128xf32> to vector<8xf32>
    %118 = vector.shape_cast %117 : vector<8xf32> to vector<8x1xf32>
    %119 = arith.mulf %99, %115 : vector<8x128xf32>
    %cst_38 = arith.constant dense<0.000000e+00> : vector<8xf32>
    %120 = vector.multi_reduction <add>, %119, %cst_38 [1] : vector<8x128xf32> to vector<8xf32>
    %121 = vector.shape_cast %120 : vector<8xf32> to vector<8x1xf32>
    %cst_39 = arith.constant dense<0.000000e+00> : vector<8x128xf32>
    %122 = tpu.matmul %115, %5, %cst_39 {dimension_numbers = #tpu.dot_dimension_numbers<[1], [0], [0], [1], [0, 0, 1, 1], [], []>} : vector<8x128xf32>, vector<128x128xf32>, vector<8x128xf32> -> vector<8x128xf32>
    %cst_40 = arith.constant dense<0.000000e+00> : vector<8x128xf32>
    %123 = tpu.matmul %115, %6, %cst_40 {dimension_numbers = #tpu.dot_dimension_numbers<[1], [0], [0], [1], [0, 0, 1, 1], [], []>} : vector<8x128xf32>, vector<128x128xf32>, vector<8x128xf32> -> vector<8x128xf32>
    %124 = vector.broadcast %118 : vector<8x1xf32> to vector<8x128xf32>
    %125 = arith.mulf %124, %122 : vector<8x128xf32>
    %126 = vector.broadcast %121 : vector<8x1xf32> to vector<8x128xf32>
    %127 = arith.mulf %126, %123 : vector<8x128xf32>
    %128 = arith.subf %125, %127 : vector<8x128xf32>
    %129 = vector.broadcast %118 : vector<8x1xf32> to vector<8x128xf32>
    %130 = arith.mulf %129, %123 : vector<8x128xf32>
    %131 = vector.broadcast %121 : vector<8x1xf32> to vector<8x128xf32>
    %132 = arith.mulf %131, %122 : vector<8x128xf32>
    %133 = arith.addf %130, %132 : vector<8x128xf32>
    %134 = arith.subf %91, %128 : vector<8x128xf32>
    %135 = arith.subf %92, %133 : vector<8x128xf32>
    %c0_41 = arith.constant 0 : index
    %c0_42 = arith.constant 0 : index
    %136 = vector.load %arg8[%c0_41, %c0_42] : memref<8x128xf32, #tpu.memory_space<vmem>>, vector<8x128xf32>
    tpu.vector_store %arg8[%c0_41, %c0_42], %134 {strides = array<i32>} : memref<8x128xf32, #tpu.memory_space<vmem>>, vector<8x128xf32>,
    %c0_43 = arith.constant 0 : index
    %c0_44 = arith.constant 0 : index
    %137 = vector.load %arg9[%c0_43, %c0_44] : memref<8x128xf32, #tpu.memory_space<vmem>>, vector<8x128xf32>
    tpu.vector_store %arg9[%c0_43, %c0_44], %135 {strides = array<i32>} : memref<8x128xf32, #tpu.memory_space<vmem>>, vector<8x128xf32>,
    return
  }
  func.func @transform_0(%arg0: i32) -> (i32, i32) {
    %c0_i32 = arith.constant 0 : i32
    %c0_i32_0 = arith.constant 0 : i32
    return %arg0, %c0_i32 : i32, i32
  }
  func.func @transform_1(%arg0: i32) -> (i32, i32) {
    %c0_i32 = arith.constant 0 : i32
    %c0_i32_0 = arith.constant 0 : i32
    return %arg0, %c0_i32 : i32, i32
  }
  func.func @transform_2(%arg0: i32) -> (i32, i32) {
    %c0_i32 = arith.constant 0 : i32
    %c0_i32_0 = arith.constant 0 : i32
    %c0_i32_1 = arith.constant 0 : i32
    return %c0_i32, %c0_i32_0 : i32, i32
  }
  func.func @transform_3(%arg0: i32) -> (i32, i32) {
    %c0_i32 = arith.constant 0 : i32
    %c0_i32_0 = arith.constant 0 : i32
    %c0_i32_1 = arith.constant 0 : i32
    return %c0_i32, %c0_i32_0 : i32, i32
  }
  func.func @transform_4(%arg0: i32) -> (i32, i32) {
    %c0_i32 = arith.constant 0 : i32
    %c0_i32_0 = arith.constant 0 : i32
    %c0_i32_1 = arith.constant 0 : i32
    return %c0_i32, %c0_i32_0 : i32, i32
  }
  func.func @transform_5(%arg0: i32) -> (i32, i32) {
    %c0_i32 = arith.constant 0 : i32
    %c0_i32_0 = arith.constant 0 : i32
    %c0_i32_1 = arith.constant 0 : i32
    return %c0_i32, %c0_i32_0 : i32, i32
  }
  func.func @transform_6(%arg0: i32) -> (i32, i32) {
    %c0_i32 = arith.constant 0 : i32
    %c0_i32_0 = arith.constant 0 : i32
    %c0_i32_1 = arith.constant 0 : i32
    return %c0_i32, %c0_i32_0 : i32, i32
  }
  func.func @transform_7(%arg0: i32) -> (i32, i32) {
    %c0_i32 = arith.constant 0 : i32
    %c0_i32_0 = arith.constant 0 : i32
    return %arg0, %c0_i32 : i32, i32
  }
  func.func @transform_8(%arg0: i32) -> (i32, i32) {
    %c0_i32 = arith.constant 0 : i32
    %c0_i32_0 = arith.constant 0 : i32
    return %arg0, %c0_i32 : i32, i32
  }
}

module attributes {stable_mosaic.version = 11 : i64} {
  func.func @_mpnet_kernel(%arg0: i32, %arg1: memref<8x128xf32, #tpu.memory_space<vmem>>, %arg2: memref<8x128xf32, #tpu.memory_space<vmem>>, %arg3: memref<128x128xf32, #tpu.memory_space<vmem>>, %arg4: memref<128x128xf32, #tpu.memory_space<vmem>>, %arg5: memref<128x128xf32, #tpu.memory_space<vmem>>, %arg6: memref<128x128xf32, #tpu.memory_space<vmem>>, %arg7: memref<128x128xf32, #tpu.memory_space<vmem>>, %arg8: memref<8x128xf32, #tpu.memory_space<vmem>>, %arg9: memref<8x128xf32, #tpu.memory_space<vmem>>) attributes {dimension_semantics = [#tpu.dimension_semantics<parallel>], iteration_bounds = array<i64: 1>, scalar_prefetch = 0 : i64, scratch_operands = 0 : i64, tpu.core_type = #tpu.core_type<tc>, window_params = [{transform_indices = @transform_0, window_bounds = array<i64: 8, 128>}, {transform_indices = @transform_1, window_bounds = array<i64: 8, 128>}, {pipeline_mode = #tpu.pipeline_mode<synchronous>, transform_indices = @transform_2, window_bounds = array<i64: 128, 128>}, {pipeline_mode = #tpu.pipeline_mode<synchronous>, transform_indices = @transform_3, window_bounds = array<i64: 128, 128>}, {pipeline_mode = #tpu.pipeline_mode<synchronous>, transform_indices = @transform_4, window_bounds = array<i64: 128, 128>}, {pipeline_mode = #tpu.pipeline_mode<synchronous>, transform_indices = @transform_5, window_bounds = array<i64: 128, 128>}, {pipeline_mode = #tpu.pipeline_mode<synchronous>, transform_indices = @transform_6, window_bounds = array<i64: 128, 128>}, {transform_indices = @transform_7, window_bounds = array<i64: 8, 128>}, {transform_indices = @transform_8, window_bounds = array<i64: 8, 128>}]} {
    %c0 = arith.constant 0 : index
    %c0_0 = arith.constant 0 : index
    %0 = vector.load %arg1[%c0, %c0_0] : memref<8x128xf32, #tpu.memory_space<vmem>>, vector<8x128xf32>
    %c0_1 = arith.constant 0 : index
    %c0_2 = arith.constant 0 : index
    %1 = vector.load %arg2[%c0_1, %c0_2] : memref<8x128xf32, #tpu.memory_space<vmem>>, vector<8x128xf32>
    %c0_3 = arith.constant 0 : index
    %c0_4 = arith.constant 0 : index
    %2 = vector.load %arg3[%c0_3, %c0_4] : memref<128x128xf32, #tpu.memory_space<vmem>>, vector<128x128xf32>
    %c0_5 = arith.constant 0 : index
    %c0_6 = arith.constant 0 : index
    %3 = vector.load %arg4[%c0_5, %c0_6] : memref<128x128xf32, #tpu.memory_space<vmem>>, vector<128x128xf32>
    %c0_7 = arith.constant 0 : index
    %c0_8 = arith.constant 0 : index
    %4 = vector.load %arg5[%c0_7, %c0_8] : memref<128x128xf32, #tpu.memory_space<vmem>>, vector<128x128xf32>
    %c0_9 = arith.constant 0 : index
    %c0_10 = arith.constant 0 : index
    %5 = vector.load %arg6[%c0_9, %c0_10] : memref<128x128xf32, #tpu.memory_space<vmem>>, vector<128x128xf32>
    %c0_11 = arith.constant 0 : index
    %c0_12 = arith.constant 0 : index
    %6 = vector.load %arg7[%c0_11, %c0_12] : memref<128x128xf32, #tpu.memory_space<vmem>>, vector<128x128xf32>
    %c0_i32 = arith.constant 0 : i32
    %cst = arith.constant dense<0.000000e+00> : vector<8x128xf32>
    %7 = tpu.matmul %0, %2, %cst {dimension_numbers = #tpu.dot_dimension_numbers<[1], [0], [0], [1], [0, 0, 1, 1], [], []>} : vector<8x128xf32>, vector<128x128xf32>, vector<8x128xf32> -> vector<8x128xf32>
    %cst_13 = arith.constant dense<0.000000e+00> : vector<8x128xf32>
    %8 = tpu.matmul %1, %3, %cst_13 {dimension_numbers = #tpu.dot_dimension_numbers<[1], [0], [0], [1], [0, 0, 1, 1], [], []>} : vector<8x128xf32>, vector<128x128xf32>, vector<8x128xf32> -> vector<8x128xf32>
    %9 = arith.addf %0, %1 : vector<8x128xf32>
    %cst_14 = arith.constant dense<0.000000e+00> : vector<8x128xf32>
    %10 = tpu.matmul %9, %4, %cst_14 {dimension_numbers = #tpu.dot_dimension_numbers<[1], [0], [0], [1], [0, 0, 1, 1], [], []>} : vector<8x128xf32>, vector<128x128xf32>, vector<8x128xf32> -> vector<8x128xf32>
    %11 = arith.addf %7, %8 : vector<8x128xf32>
    %12 = arith.subf %10, %7 : vector<8x128xf32>
    %13 = arith.addf %12, %8 : vector<8x128xf32>
    %14 = arith.mulf %11, %11 : vector<8x128xf32>
    %15 = arith.mulf %13, %13 : vector<8x128xf32>
    %16 = arith.addf %14, %15 : vector<8x128xf32>
    %cst_15 = arith.constant dense<0xFF800000> : vector<8xf32>
    %17 = vector.multi_reduction <maximumf>, %16, %cst_15 [1] : vector<8x128xf32> to vector<8xf32>
    %18 = vector.shape_cast %17 : vector<8xf32> to vector<8x1xf32>
    %19 = tpu.iota {dimensions = array<i32: 1>} : vector<8x128xi32>
    %20 = vector.broadcast %18 : vector<8x1xf32> to vector<8x128xf32>
    %21 = arith.cmpf oeq, %16, %20 : vector<8x128xf32>
    %c128_i32 = arith.constant 128 : i32
    %22 = vector.broadcast %c128_i32 : i32 to vector<8x128xi32>
    %23 = arith.select %21, %19, %22 : vector<8x128xi1>, vector<8x128xi32>
    %cst_16 = arith.constant dense<2147483647> : vector<8xi32>
    %24 = vector.multi_reduction <minsi>, %23, %cst_16 [1] : vector<8x128xi32> to vector<8xi32>
    %25 = vector.shape_cast %24 : vector<8xi32> to vector<8x1xi32>
    %26 = vector.broadcast %25 : vector<8x1xi32> to vector<8x128xi32>
    %27 = arith.cmpi eq, %19, %26 : vector<8x128xi32>
    %28 = arith.extui %27 : vector<8x128xi1> to vector<8x128xi32>
    %29 = arith.sitofp %28 : vector<8x128xi32> to vector<8x128xf32>
    %30 = arith.mulf %11, %29 : vector<8x128xf32>
    %cst_17 = arith.constant dense<0.000000e+00> : vector<8xf32>
    %31 = vector.multi_reduction <add>, %30, %cst_17 [1] : vector<8x128xf32> to vector<8xf32>
    %32 = vector.shape_cast %31 : vector<8xf32> to vector<8x1xf32>
    %33 = arith.mulf %13, %29 : vector<8x128xf32>
    %cst_18 = arith.constant dense<0.000000e+00> : vector<8xf32>
    %34 = vector.multi_reduction <add>, %33, %cst_18 [1] : vector<8x128xf32> to vector<8xf32>
    %35 = vector.shape_cast %34 : vector<8xf32> to vector<8x1xf32>
    %cst_19 = arith.constant dense<0.000000e+00> : vector<8x128xf32>
    %36 = tpu.matmul %29, %5, %cst_19 {dimension_numbers = #tpu.dot_dimension_numbers<[1], [0], [0], [1], [0, 0, 1, 1], [], []>} : vector<8x128xf32>, vector<128x128xf32>, vector<8x128xf32> -> vector<8x128xf32>
    %cst_20 = arith.constant dense<0.000000e+00> : vector<8x128xf32>
    %37 = tpu.matmul %29, %6, %cst_20 {dimension_numbers = #tpu.dot_dimension_numbers<[1], [0], [0], [1], [0, 0, 1, 1], [], []>} : vector<8x128xf32>, vector<128x128xf32>, vector<8x128xf32> -> vector<8x128xf32>
    %38 = vector.broadcast %32 : vector<8x1xf32> to vector<8x128xf32>
    %39 = arith.mulf %38, %36 : vector<8x128xf32>
    %40 = vector.broadcast %35 : vector<8x1xf32> to vector<8x128xf32>
    %41 = arith.mulf %40, %37 : vector<8x128xf32>
    %42 = arith.subf %39, %41 : vector<8x128xf32>
    %43 = vector.broadcast %32 : vector<8x1xf32> to vector<8x128xf32>
    %44 = arith.mulf %43, %37 : vector<8x128xf32>
    %45 = vector.broadcast %35 : vector<8x1xf32> to vector<8x128xf32>
    %46 = arith.mulf %45, %36 : vector<8x128xf32>
    %47 = arith.addf %44, %46 : vector<8x128xf32>
    %48 = arith.subf %0, %42 : vector<8x128xf32>
    %49 = arith.subf %1, %47 : vector<8x128xf32>
    %c1_i32 = arith.constant 1 : i32
    %cst_21 = arith.constant dense<0.000000e+00> : vector<8x128xf32>
    %50 = tpu.matmul %48, %2, %cst_21 {dimension_numbers = #tpu.dot_dimension_numbers<[1], [0], [0], [1], [0, 0, 1, 1], [], []>} : vector<8x128xf32>, vector<128x128xf32>, vector<8x128xf32> -> vector<8x128xf32>
    %cst_22 = arith.constant dense<0.000000e+00> : vector<8x128xf32>
    %51 = tpu.matmul %49, %3, %cst_22 {dimension_numbers = #tpu.dot_dimension_numbers<[1], [0], [0], [1], [0, 0, 1, 1], [], []>} : vector<8x128xf32>, vector<128x128xf32>, vector<8x128xf32> -> vector<8x128xf32>
    %52 = arith.addf %48, %49 : vector<8x128xf32>
    %cst_23 = arith.constant dense<0.000000e+00> : vector<8x128xf32>
    %53 = tpu.matmul %52, %4, %cst_23 {dimension_numbers = #tpu.dot_dimension_numbers<[1], [0], [0], [1], [0, 0, 1, 1], [], []>} : vector<8x128xf32>, vector<128x128xf32>, vector<8x128xf32> -> vector<8x128xf32>
    %54 = arith.addf %50, %51 : vector<8x128xf32>
    %55 = arith.subf %53, %50 : vector<8x128xf32>
    %56 = arith.addf %55, %51 : vector<8x128xf32>
    %57 = arith.mulf %54, %54 : vector<8x128xf32>
    %58 = arith.mulf %56, %56 : vector<8x128xf32>
    %59 = arith.addf %57, %58 : vector<8x128xf32>
    %cst_24 = arith.constant dense<0xFF800000> : vector<8xf32>
    %60 = vector.multi_reduction <maximumf>, %59, %cst_24 [1] : vector<8x128xf32> to vector<8xf32>
    %61 = vector.shape_cast %60 : vector<8xf32> to vector<8x1xf32>
    %62 = tpu.iota {dimensions = array<i32: 1>} : vector<8x128xi32>
    %63 = vector.broadcast %61 : vector<8x1xf32> to vector<8x128xf32>
    %64 = arith.cmpf oeq, %59, %63 : vector<8x128xf32>
    %c128_i32_25 = arith.constant 128 : i32
    %65 = vector.broadcast %c128_i32_25 : i32 to vector<8x128xi32>
    %66 = arith.select %64, %62, %65 : vector<8x128xi1>, vector<8x128xi32>
    %cst_26 = arith.constant dense<2147483647> : vector<8xi32>
    %67 = vector.multi_reduction <minsi>, %66, %cst_26 [1] : vector<8x128xi32> to vector<8xi32>
    %68 = vector.shape_cast %67 : vector<8xi32> to vector<8x1xi32>
    %69 = vector.broadcast %68 : vector<8x1xi32> to vector<8x128xi32>
    %70 = arith.cmpi eq, %62, %69 : vector<8x128xi32>
    %71 = arith.extui %70 : vector<8x128xi1> to vector<8x128xi32>
    %72 = arith.sitofp %71 : vector<8x128xi32> to vector<8x128xf32>
    %73 = arith.mulf %54, %72 : vector<8x128xf32>
    %cst_27 = arith.constant dense<0.000000e+00> : vector<8xf32>
    %74 = vector.multi_reduction <add>, %73, %cst_27 [1] : vector<8x128xf32> to vector<8xf32>
    %75 = vector.shape_cast %74 : vector<8xf32> to vector<8x1xf32>
    %76 = arith.mulf %56, %72 : vector<8x128xf32>
    %cst_28 = arith.constant dense<0.000000e+00> : vector<8xf32>
    %77 = vector.multi_reduction <add>, %76, %cst_28 [1] : vector<8x128xf32> to vector<8xf32>
    %78 = vector.shape_cast %77 : vector<8xf32> to vector<8x1xf32>
    %cst_29 = arith.constant dense<0.000000e+00> : vector<8x128xf32>
    %79 = tpu.matmul %72, %5, %cst_29 {dimension_numbers = #tpu.dot_dimension_numbers<[1], [0], [0], [1], [0, 0, 1, 1], [], []>} : vector<8x128xf32>, vector<128x128xf32>, vector<8x128xf32> -> vector<8x128xf32>
    %cst_30 = arith.constant dense<0.000000e+00> : vector<8x128xf32>
    %80 = tpu.matmul %72, %6, %cst_30 {dimension_numbers = #tpu.dot_dimension_numbers<[1], [0], [0], [1], [0, 0, 1, 1], [], []>} : vector<8x128xf32>, vector<128x128xf32>, vector<8x128xf32> -> vector<8x128xf32>
    %81 = vector.broadcast %75 : vector<8x1xf32> to vector<8x128xf32>
    %82 = arith.mulf %81, %79 : vector<8x128xf32>
    %83 = vector.broadcast %78 : vector<8x1xf32> to vector<8x128xf32>
    %84 = arith.mulf %83, %80 : vector<8x128xf32>
    %85 = arith.subf %82, %84 : vector<8x128xf32>
    %86 = vector.broadcast %75 : vector<8x1xf32> to vector<8x128xf32>
    %87 = arith.mulf %86, %80 : vector<8x128xf32>
    %88 = vector.broadcast %78 : vector<8x1xf32> to vector<8x128xf32>
    %89 = arith.mulf %88, %79 : vector<8x128xf32>
    %90 = arith.addf %87, %89 : vector<8x128xf32>
    %91 = arith.subf %48, %85 : vector<8x128xf32>
    %92 = arith.subf %49, %90 : vector<8x128xf32>
    %c2_i32 = arith.constant 2 : i32
    %cst_31 = arith.constant dense<0.000000e+00> : vector<8x128xf32>
    %93 = tpu.matmul %91, %2, %cst_31 {dimension_numbers = #tpu.dot_dimension_numbers<[1], [0], [0], [1], [0, 0, 1, 1], [], []>} : vector<8x128xf32>, vector<128x128xf32>, vector<8x128xf32> -> vector<8x128xf32>
    %cst_32 = arith.constant dense<0.000000e+00> : vector<8x128xf32>
    %94 = tpu.matmul %92, %3, %cst_32 {dimension_numbers = #tpu.dot_dimension_numbers<[1], [0], [0], [1], [0, 0, 1, 1], [], []>} : vector<8x128xf32>, vector<128x128xf32>, vector<8x128xf32> -> vector<8x128xf32>
    %95 = arith.addf %91, %92 : vector<8x128xf32>
    %cst_33 = arith.constant dense<0.000000e+00> : vector<8x128xf32>
    %96 = tpu.matmul %95, %4, %cst_33 {dimension_numbers = #tpu.dot_dimension_numbers<[1], [0], [0], [1], [0, 0, 1, 1], [], []>} : vector<8x128xf32>, vector<128x128xf32>, vector<8x128xf32> -> vector<8x128xf32>
    %97 = arith.addf %93, %94 : vector<8x128xf32>
    %98 = arith.subf %96, %93 : vector<8x128xf32>
    %99 = arith.addf %98, %94 : vector<8x128xf32>
    %100 = arith.mulf %97, %97 : vector<8x128xf32>
    %101 = arith.mulf %99, %99 : vector<8x128xf32>
    %102 = arith.addf %100, %101 : vector<8x128xf32>
    %cst_34 = arith.constant dense<0xFF800000> : vector<8xf32>
    %103 = vector.multi_reduction <maximumf>, %102, %cst_34 [1] : vector<8x128xf32> to vector<8xf32>
    %104 = vector.shape_cast %103 : vector<8xf32> to vector<8x1xf32>
    %105 = tpu.iota {dimensions = array<i32: 1>} : vector<8x128xi32>
    %106 = vector.broadcast %104 : vector<8x1xf32> to vector<8x128xf32>
    %107 = arith.cmpf oeq, %102, %106 : vector<8x128xf32>
    %c128_i32_35 = arith.constant 128 : i32
    %108 = vector.broadcast %c128_i32_35 : i32 to vector<8x128xi32>
    %109 = arith.select %107, %105, %108 : vector<8x128xi1>, vector<8x128xi32>
    %cst_36 = arith.constant dense<2147483647> : vector<8xi32>
    %110 = vector.multi_reduction <minsi>, %109, %cst_36 [1] : vector<8x128xi32> to vector<8xi32>
    %111 = vector.shape_cast %110 : vector<8xi32> to vector<8x1xi32>
    %112 = vector.broadcast %111 : vector<8x1xi32> to vector<8x128xi32>
    %113 = arith.cmpi eq, %105, %112 : vector<8x128xi32>
    %114 = arith.extui %113 : vector<8x128xi1> to vector<8x128xi32>
    %115 = arith.sitofp %114 : vector<8x128xi32> to vector<8x128xf32>
    %116 = arith.mulf %97, %115 : vector<8x128xf32>
    %cst_37 = arith.constant dense<0.000000e+00> : vector<8xf32>
    %117 = vector.multi_reduction <add>, %116, %cst_37 [1] : vector<8x128xf32> to vector<8xf32>
    %118 = vector.shape_cast %117 : vector<8xf32> to vector<8x1xf32>
    %119 = arith.mulf %99, %115 : vector<8x128xf32>
    %cst_38 = arith.constant dense<0.000000e+00> : vector<8xf32>
    %120 = vector.multi_reduction <add>, %119, %cst_38 [1] : vector<8x128xf32> to vector<8xf32>
    %121 = vector.shape_cast %120 : vector<8xf32> to vector<8x1xf32>
    %cst_39 = arith.constant dense<0.000000e+00> : vector<8x128xf32>
    %122 = tpu.matmul %115, %5, %cst_39 {dimension_numbers = #tpu.dot_dimension_numbers<[1], [0], [0], [1], [0, 0, 1, 1], [], []>} : vector<8x128xf32>, vector<128x128xf32>, vector<8x128xf32> -> vector<8x128xf32>
    %cst_40 = arith.constant dense<0.000000e+00> : vector<8x128xf32>
    %123 = tpu.matmul %115, %6, %cst_40 {dimension_numbers = #tpu.dot_dimension_numbers<[1], [0], [0], [1], [0, 0, 1, 1], [], []>} : vector<8x128xf32>, vector<128x128xf32>, vector<8x128xf32> -> vector<8x128xf32>
    %124 = vector.broadcast %118 : vector<8x1xf32> to vector<8x128xf32>
    %125 = arith.mulf %124, %122 : vector<8x128xf32>
    %126 = vector.broadcast %121 : vector<8x1xf32> to vector<8x128xf32>
    %127 = arith.mulf %126, %123 : vector<8x128xf32>
    %128 = arith.subf %125, %127 : vector<8x128xf32>
    %129 = vector.broadcast %118 : vector<8x1xf32> to vector<8x128xf32>
    %130 = arith.mulf %129, %123 : vector<8x128xf32>
    %131 = vector.broadcast %121 : vector<8x1xf32> to vector<8x128xf32>
    %132 = arith.mulf %131, %122 : vector<8x128xf32>
    %133 = arith.addf %130, %132 : vector<8x128xf32>
    %134 = arith.subf %91, %128 : vector<8x128xf32>
    %135 = arith.subf %92, %133 : vector<8x128xf32>
    %c0_41 = arith.constant 0 : index
    %c0_42 = arith.constant 0 : index
    %136 = vector.load %arg8[%c0_41, %c0_42] : memref<8x128xf32, #tpu.memory_space<vmem>>, vector<8x128xf32>
    tpu.vector_store %arg8[%c0_41, %c0_42], %134 {strides = array<i32>} : memref<8x128xf32, #tpu.memory_space<vmem>>, vector<8x128xf32>,
    %c0_43 = arith.constant 0 : index
    %c0_44 = arith.constant 0 : index
    %137 = vector.load %arg9[%c0_43, %c0_44] : memref<8x128xf32, #tpu.memory_space<vmem>>, vector<8x128xf32>
    tpu.vector_store %arg9[%c0_43, %c0_44], %135 {strides = array<i32>} : memref<8x128xf32, #tpu.memory_space<vmem>>, vector<8x128xf32>,
    return
  }
  func.func @transform_0(%arg0: i32) -> (i32, i32) {
    %c0_i32 = arith.constant 0 : i32
    %c0_i32_0 = arith.constant 0 : i32
    return %arg0, %c0_i32 : i32, i32
  }
  func.func @transform_1(%arg0: i32) -> (i32, i32) {
    %c0_i32 = arith.constant 0 : i32
    %c0_i32_0 = arith.constant 0 : i32
    return %arg0, %c0_i32 : i32, i32
  }
  func.func @transform_2(%arg0: i32) -> (i32, i32) {
    %c0_i32 = arith.constant 0 : i32
    %c0_i32_0 = arith.constant 0 : i32
    %c0_i32_1 = arith.constant 0 : i32
    return %c0_i32, %c0_i32_0 : i32, i32
  }
  func.func @transform_3(%arg0: i32) -> (i32, i32) {
    %c0_i32 = arith.constant 0 : i32
    %c0_i32_0 = arith.constant 0 : i32
    %c0_i32_1 = arith.constant 0 : i32
    return %c0_i32, %c0_i32_0 : i32, i32
  }
  func.func @transform_4(%arg0: i32) -> (i32, i32) {
    %c0_i32 = arith.constant 0 : i32
    %c0_i32_0 = arith.constant 0 : i32
    %c0_i32_1 = arith.constant 0 : i32
    return %c0_i32, %c0_i32_0 : i32, i32
  }
  func.func @transform_5(%arg0: i32) -> (i32, i32) {
    %c0_i32 = arith.constant 0 : i32
    %c0_i32_0 = arith.constant 0 : i32
    %c0_i32_1 = arith.constant 0 : i32
    return %c0_i32, %c0_i32_0 : i32, i32
  }
  func.func @transform_6(%arg0: i32) -> (i32, i32) {
    %c0_i32 = arith.constant 0 : i32
    %c0_i32_0 = arith.constant 0 : i32
    %c0_i32_1 = arith.constant 0 : i32
    return %c0_i32, %c0_i32_0 : i32, i32
  }
  func.func @transform_7(%arg0: i32) -> (i32, i32) {
    %c0_i32 = arith.constant 0 : i32
    %c0_i32_0 = arith.constant 0 : i32
    return %arg0, %c0_i32 : i32, i32
  }
  func.func @transform_8(%arg0: i32) -> (i32, i32) {
    %c0_i32 = arith.constant 0 : i32
    %c0_i32_0 = arith.constant 0 : i32
    return %arg0, %c0_i32 : i32, i32
  }
}

</mosaic_0001>

<bundles_post_ra>
// kernel: tpu_custom_call.1
= control target key start
LH: loop header
LB: loop body
LE: loop exit
PB: predicated region body
PF: predicated region fallthrough
CT: control target
= control target key end

     0   :  { %14 = vsyncpa [#allocation3], 0  ;;  %s3387_s0 = inlined_call_operand.hbm [shape: f32[8,128], index: 0, kind: input, shape index: {}]   ;;  %s3388_s1 = inlined_call_operand.hbm [shape: f32[8,128], index: 1, kind: input, shape index: {}]   ;;  %s3389_s2 = inlined_call_operand.hbm [shape: f32[128,128], index: 2, kind: input, shape index: {}]   ;;  %s3390_s3 = inlined_call_operand.hbm [shape: f32[128,128], index: 3, kind: input, shape index: {}]   ;;  %s3391_s4 = inlined_call_operand.hbm [shape: f32[128,128], index: 4, kind: input, shape index: {}]   ;;  %s3392_s5 = inlined_call_operand.hbm [shape: f32[128,128], index: 5, kind: input, shape index: {}]   ;;  %s3393_s6 = inlined_call_operand.hbm [shape: f32[128,128], index: 6, kind: input, shape index: {}]   ;;  %s3394_s7 = inlined_call_operand.hbm [shape: f32[8,128], index: 7, kind: output, shape index: {0}]   ;;  %s3395_s8 = inlined_call_operand.hbm [shape: f32[8,128], index: 8, kind: output, shape index: {1}]  }
   0x1   :  { %15 = vsyncpa [#allocation6], 0 }
   0x2   :  { %16 = vsyncpa [#allocation9], 0 }
   0x3   :  { %17 = vsyncpa [#allocation12], 0 }
   0x4   :  { %18 = vsyncpa [#allocation4], 0 }
   0x5   :  { %19 = vsyncpa [#allocation16], 0  ;;  %s2789_s27 = smov [#allocation5]   ;;  %s2579_s9 = scalar_lea.hbm %s3388_s1, 128 }
   0x6   :  { %s36_s28 = sshll.u32 %s2789_s27, 4  ;;  %p2580_p0 = scmp.ne.s32.totalorder %s3388_s1, %s2579_s9  ;;  %s37_s28 = int_to_ptr.vmem [resolvable:$true] %s36_s28 }
   0x7   :  { %p2583_p1 = scmp.lt.u32.totalorder %s2579_s9, %s3388_s1 }
   0x9   :  { %p2585_p2 = pnand %p2583_p1, %p2580_p0 }
   0xb   :  { %2588 = shalt.err (!%p2585_p2)
}
   0xc   :  { %s2589_s14 = scalar_lea.vmem %s37_s28, 128  ;;  %p2594_p4 = scmp.lt.s32.totalorder %s37_s28, %s37_s28 }
   0xd   :  { %p2590_p3 = scmp.ne.s32.totalorder %s37_s28, %s2589_s14  ;;  %p2595_p5 = scmp.lt.s32.totalorder %s2589_s14, %s2589_s14 }
   0xf   :  { %p2596_p6 = por %p2595_p5, %p2594_p4 }
  0x11   :  { %p2597_p7 = pnand %p2596_p6, %p2590_p3 }
  0x13   :  { %2600 = shalt.err (!%p2597_p7)
}
  0x14   :  { %39 = dma.hbm_to_vmem [thread:$0]  %s3388_s1, 128, %s37_s28, [#allocation6]  }
  0x15   :  { %s2790_s17 = smov [#allocation8]   ;;  %s2791_s19 = smov [#allocation11]  }
  0x16   :  { %s57_s18 = sshll.u32 %s2790_s17, 4  ;;  %s81_s20 = sshll.u32 %s2791_s19, 4  ;;  %s58_s18 = int_to_ptr.vmem [resolvable:$true] %s57_s18  ;;  %s82_s20 = int_to_ptr.vmem [resolvable:$true] %s81_s20 }
  0x17   :  { %s2601_s23 = scalar_lea.hbm %s3390_s3, 2048 }
  0x18   :  { %p2602_p8 = scmp.ne.s32.totalorder %s3390_s3, %s2601_s23  ;;  %p2605_p9 = scmp.lt.u32.totalorder %s2601_s23, %s3390_s3 }
  0x1a   :  { %p2607_p10 = pnand %p2605_p9, %p2602_p8 }
  0x1c   :  { %2610 = shalt.err (!%p2607_p10)
}
  0x1d   :  { %s2611_s1 = scalar_lea.vmem %s58_s18, 2048  ;;  %p2616_p12 = scmp.lt.s32.totalorder %s58_s18, %s58_s18 }
  0x1e   :  { %p2612_p11 = scmp.ne.s32.totalorder %s58_s18, %s2611_s1  ;;  %p2617_p13 = scmp.lt.s32.totalorder %s2611_s1, %s2611_s1 }
  0x20   :  { %p2618_p0 = por %p2617_p13, %p2616_p12 }
  0x22   :  { %p2619_p1 = pnand %p2618_p0, %p2612_p11 }
  0x24   :  { %2622 = shalt.err (!%p2619_p1)
}
  0x25   :  { %s2792_s28 = smov 128   ;;  %s2793_s29 = smov 8  }
  0x26   :  { %63 = dma.hbm_to_vmem [thread:$0]  %s3390_s3, 2048, %s58_s18, [#allocation9], %s2792_s28, %s2792_s28, %s2793_s29  }
  0x27   :  { %s2623_s12 = scalar_lea.hbm %s3392_s5, 2048 }
  0x28   :  { %p2624_p2 = scmp.ne.s32.totalorder %s3392_s5, %s2623_s12  ;;  %p2627_p3 = scmp.lt.u32.totalorder %s2623_s12, %s3392_s5 }
  0x2a   :  { %p2629_p4 = pnand %p2627_p3, %p2624_p2 }
  0x2c   :  { %2632 = shalt.err (!%p2629_p4)
}
  0x2d   :  { %s2633_s17 = scalar_lea.vmem %s82_s20, 2048  ;;  %p2638_p6 = scmp.lt.s32.totalorder %s82_s20, %s82_s20 }
  0x2e   :  { %p2634_p5 = scmp.ne.s32.totalorder %s82_s20, %s2633_s17  ;;  %p2639_p7 = scmp.lt.s32.totalorder %s2633_s17, %s2633_s17 }
  0x30   :  { %p2640_p8 = por %p2639_p7, %p2638_p6 }
  0x32   :  { %p2641_p9 = pnand %p2640_p8, %p2634_p5 }
  0x34   :  { %2644 = shalt.err (!%p2641_p9)
}
  0x35   :  { %87 = dma.hbm_to_vmem [thread:$0]  %s3392_s5, 2048, %s82_s20, [#allocation12], %s2792_s28, %s2792_s28, %s2793_s29  }
  0x36   :  { %s2794_s19 = smov [#allocation2]   ;;  %s2795_s22 = smov [#allocation7]  }
  0x37   :  { %s26_s21 = sshll.u32 %s2794_s19, 4  ;;  %s45_s23 = sshll.u32 %s2795_s22, 4  ;;  %s27_s21 = int_to_ptr.vmem [resolvable:$true] %s26_s21  ;;  %s46_s23 = int_to_ptr.vmem [resolvable:$true] %s45_s23 }
  0x38   :  { %s2645_s26 = scalar_lea.hbm %s3387_s0, 128 }
  0x39   :  { %p2646_p10 = scmp.ne.s32.totalorder %s3387_s0, %s2645_s26  ;;  %p2649_p11 = scmp.lt.u32.totalorder %s2645_s26, %s3387_s0 }
  0x3b   :  { %p2651_p12 = pnand %p2649_p11, %p2646_p10 }
  0x3d   :  { %2654 = shalt.err (!%p2651_p12)
}
  0x3e   :  { %s2655_s5 = scalar_lea.vmem %s27_s21, 128  ;;  %p2660_p0 = scmp.lt.s32.totalorder %s27_s21, %s27_s21 }
  0x3f   :  { %p2656_p13 = scmp.ne.s32.totalorder %s27_s21, %s2655_s5  ;;  %p2661_p1 = scmp.lt.s32.totalorder %s2655_s5, %s2655_s5 }
  0x41   :  { %p2662_p2 = por %p2661_p1, %p2660_p0 }
  0x43   :  { %p2663_p3 = pnand %p2662_p2, %p2656_p13 }
  0x45   :  { %2666 = shalt.err (!%p2663_p3)
}
  0x46   :  { %29 = dma.hbm_to_vmem [thread:$0]  %s3387_s0, 128, %s27_s21, [#allocation3]  }
  0x47   :  { %s2667_s13 = scalar_lea.hbm %s3389_s2, 2048 }
  0x48   :  { %p2668_p4 = scmp.ne.s32.totalorder %s3389_s2, %s2667_s13  ;;  %p2671_p5 = scmp.lt.u32.totalorder %s2667_s13, %s3389_s2 }
  0x4a   :  { %p2673_p6 = pnand %p2671_p5, %p2668_p4 }
  0x4c   :  { %2676 = shalt.err (!%p2673_p6)
}
  0x4d   :  { %s2677_s3 = scalar_lea.vmem %s46_s23, 2048  ;;  %p2682_p8 = scmp.lt.s32.totalorder %s46_s23, %s46_s23 }
  0x4e   :  { %p2678_p7 = scmp.ne.s32.totalorder %s46_s23, %s2677_s3  ;;  %p2683_p9 = scmp.lt.s32.totalorder %s2677_s3, %s2677_s3 }
  0x50   :  { %p2684_p10 = por %p2683_p9, %p2682_p8 }
  0x52   :  { %p2685_p11 = pnand %p2684_p10, %p2678_p7 }
  0x54   :  { %2688 = shalt.err (!%p2685_p11)
}
  0x55   :  { %51 = dma.hbm_to_vmem [thread:$0]  %s3389_s2, 2048, %s46_s23, [#allocation6], %s2792_s28, %s2792_s28, %s2793_s29  }
  0x56   :  { %s2796_s19 = smov [#allocation10]   ;;  %s2797_s22 = smov [#allocation13]  }
  0x57   :  { %s69_s21 = sshll.u32 %s2796_s19, 4  ;;  %s93_s24 = sshll.u32 %s2797_s22, 4  ;;  %s70_s21 = int_to_ptr.vmem [resolvable:$true] %s69_s21  ;;  %s94_s24 = int_to_ptr.vmem [resolvable:$true] %s93_s24 }
  0x58   :  { %s2689_s27 = scalar_lea.hbm %s3391_s4, 2048 }
  0x59   :  { %p2690_p12 = scmp.ne.s32.totalorder %s3391_s4, %s2689_s27  ;;  %p2693_p13 = scmp.lt.u32.totalorder %s2689_s27, %s3391_s4 }
  0x5b   :  { %p2695_p0 = pnand %p2693_p13, %p2690_p12 }
  0x5d   :  { %2698 = shalt.err (!%p2695_p0)
}
  0x5e   :  { %s2699_s2 = scalar_lea.vmem %s70_s21, 2048  ;;  %p2704_p2 = scmp.lt.s32.totalorder %s70_s21, %s70_s21 }
  0x5f   :  { %p2700_p1 = scmp.ne.s32.totalorder %s70_s21, %s2699_s2  ;;  %p2705_p3 = scmp.lt.s32.totalorder %s2699_s2, %s2699_s2 }
  0x61   :  { %p2706_p4 = por %p2705_p3, %p2704_p2 }
  0x63   :  { %p2707_p5 = pnand %p2706_p4, %p2700_p1 }
  0x65   :  { %2710 = shalt.err (!%p2707_p5)
}
  0x66   :  { %75 = dma.hbm_to_vmem [thread:$0]  %s3391_s4, 2048, %s70_s21, [#allocation9], %s2792_s28, %s2792_s28, %s2793_s29  }
  0x67   :  { %s2711_s12 = scalar_lea.hbm %s3393_s6, 2048 }
  0x68   :  { %p2712_p6 = scmp.ne.s32.totalorder %s3393_s6, %s2711_s12  ;;  %p2715_p7 = scmp.lt.u32.totalorder %s2711_s12, %s3393_s6 }
  0x6a   :  { %p2717_p8 = pnand %p2715_p7, %p2712_p6 }
  0x6c   :  { %2720 = shalt.err (!%p2717_p8)
}
  0x6d   :  { %s2721_s17 = scalar_lea.vmem %s94_s24, 2048  ;;  %p2726_p10 = scmp.lt.s32.totalorder %s94_s24, %s94_s24 }
  0x6e   :  { %p2722_p9 = scmp.ne.s32.totalorder %s94_s24, %s2721_s17  ;;  %p2727_p11 = scmp.lt.s32.totalorder %s2721_s17, %s2721_s17 }
  0x70   :  { %p2728_p12 = por %p2727_p11, %p2726_p10 }
  0x72   :  { %p2729_p13 = pnand %p2728_p12, %p2722_p9 }
  0x74   :  { %2732 = shalt.err (!%p2729_p13)
}
  0x75   :  { %99 = dma.hbm_to_vmem [thread:$0]  %s3393_s6, 2048, %s94_s24, [#allocation12], %s2792_s28, %s2792_s28, %s2793_s29  }
  0x76   :  { %2777 = dma.done.wait [#allocation3], 128  }
  0x77   :  { %2778 = vsyncadd [#allocation3], 4294967168 }
  0x78   :  { %2779 = dma.done.wait [#allocation6], 2176  }
  0x79   :  { %2780 = vsyncadd [#allocation6], 4294965120 }
  0x7a   :  { %2781 = dma.done.wait [#allocation9], 4096  }
  0x7b   :  { %2782 = vsyncadd [#allocation9], 4294963200 }
  0x7c   :  { %2783 = dma.done.wait [#allocation12], 4096  }
  0x7d   :  { %2784 = vsyncadd [#allocation12], 4294963200  ;;  %v3396_v0 = vmov 0.0|0.0   ;;  %vm2799_vm0 = vmmov 0   ;;  %v2800_v1 = vmov 0.0   ;;  %v123_v2 = vld [vmem:[#allocation7] sm:$0xff] }
  0x7e   :  { %2204 = vmatprep.subr.bf16.mxu0 %v3396_v0  ;;  %2228 = vmatprep.subr.bf16.mxu1 %v3396_v0  ;;  %v124_v3 = vld [vmem:[#allocation7 + $0x8] sm:$0xff]  ;;  %v139_v4 = vld [vmem:[#allocation8] sm:$0xff]  ;;  %v125_v7 = vld [vmem:[#allocation7 + $0x10] sm:$0xff]  ;;  %s2802_s6 = smov [#allocation14]   ;;  %s2803_s29 = smov [#allocation15]  }
  0x7f   :  { %1711 = vmatprep.mubr.msk.f32.mxu0 %vm2799_vm0, %v2800_v1  ;;  %1746 = vmatprep.mubr.msk.f32.mxu1 %vm2799_vm0, %v2800_v1  ;;  %v2954_v5 = vpack.c.bf16 %v124_v3, %v123_v2  ;;  %v140_v6 = vld [vmem:[#allocation8 + $0x8] sm:$0xff]  ;;  %v126_v8 = vld [vmem:[#allocation7 + $0x18] sm:$0xff]  ;;  %v141_v10 = vld [vmem:[#allocation8 + $0x10] sm:$0xff]  ;;  %s1389_s28 = sshll.u32 %s2802_s6, 4  ;;  %s1399_s0 = sshll.u32 %s2803_s29, 4  ;;  %s1390_s28 = int_to_ptr.vmem [resolvable:$true] %s1389_s28  ;;  %s1400_s0 = int_to_ptr.vmem [resolvable:$true] %s1399_s0 }
  0x80   :  { %v2956_v9 = vpack.c.bf16 %v140_v6, %v139_v4  ;;  %v142_v11 = vld [vmem:[#allocation8 + $0x18] sm:$0xff]  ;;  %v2959_v12 = vpack.c.bf16 %v126_v8, %v125_v7  ;;  %v127_v14 = vld [vmem:[#allocation7 + $0x20] sm:$0xff]  ;;  %v128_v15 = vld [vmem:[#allocation7 + $0x28] sm:$0xff]  ;;  %s2733_s18 = scalar_lea.vmem %s1390_s28, 128  ;;  %p2738_p1 = scmp.lt.s32.totalorder %s1390_s28, %s1390_s28 }
  0x81   :  { %2206 = vmatpush3.bf16.msra.mxu0 %v2954_v5  ;;  %v2963_v13 = vpack.c.bf16 %v142_v11, %v141_v10  ;;  %v143_v16 = vld [vmem:[#allocation8 + $0x20] sm:$0xff]  ;;  %v144_v17 = vld [vmem:[#allocation8 + $0x28] sm:$0xff]  ;;  %v2967_v18 = vpack.c.bf16 %v128_v15, %v127_v14  ;;  %v129_v20 = vld [vmem:[#allocation7 + $0x30] sm:$0xff]  ;;  %p2734_p0 = scmp.ne.s32.totalorder %s1390_s28, %s2733_s18  ;;  %p2739_p2 = scmp.lt.s32.totalorder %s2733_s18, %s2733_s18 }
  0x82   :  { %2230 = vmatpush3.bf16.msra.mxu1 %v2956_v9  ;;  %2207 = vmatprep.subr.bf16.mxu0 %v3396_v0  ;;  %v2971_v19 = vpack.c.bf16 %v144_v17, %v143_v16  ;;  %v130_v21 = vld [vmem:[#allocation7 + $0x38] sm:$0xff]  ;;  %v145_v22 = vld [vmem:[#allocation8 + $0x30] sm:$0xff]  ;;  %v131_v26 = vld [vmem:[#allocation7 + $0x40] sm:$0xff] }
  0x83   :  { %2231 = vmatprep.subr.bf16.mxu1 %v3396_v0  ;;  %v146_v23 = vld [vmem:[#allocation8 + $0x38] sm:$0xff]  ;;  %v2975_v24 = vpack.c.bf16 %v130_v21, %v129_v20  ;;  %v132_v27 = vld [vmem:[#allocation7 + $0x48] sm:$0xff]  ;;  %v147_v28 = vld [vmem:[#allocation8 + $0x40] sm:$0xff]  ;;  %p2740_p3 = por %p2739_p2, %p2738_p1 }
  0x84   :  { %v2979_v25 = vpack.c.bf16 %v146_v23, %v145_v22  ;;  %v148_v29 = vld [vmem:[#allocation8 + $0x48] sm:$0xff]  ;;  %v2983_v30 = vpack.c.bf16 %v132_v27, %v131_v26  ;;  %v133_v32 = vld [vmem:[#allocation7 + $0x50] sm:$0xff]  ;;  %v134_v33 = vld [vmem:[#allocation7 + $0x58] sm:$0xff] }
  0x85   :  { %2209 = vmatpush3.bf16.msra.mxu0 %v2959_v12  ;;  %v2987_v31 = vpack.c.bf16 %v148_v29, %v147_v28  ;;  %v149_v34 = vld [vmem:[#allocation8 + $0x50] sm:$0xff]  ;;  %v150_v35 = vld [vmem:[#allocation8 + $0x58] sm:$0xff]  ;;  %v2991_v36 = vpack.c.bf16 %v134_v33, %v133_v32  ;;  %v135_v38 = vld [vmem:[#allocation7 + $0x60] sm:$0xff]  ;;  %p2741_p4 = pnand %p2740_p3, %p2734_p0 }
  0x86   :  { %2233 = vmatpush3.bf16.msra.mxu1 %v2963_v13  ;;  %2210 = vmatprep.subr.bf16.mxu0 %v3396_v0  ;;  %v2995_v37 = vpack.c.bf16 %v150_v35, %v149_v34  ;;  %v136_v39 = vld [vmem:[#allocation7 + $0x68] sm:$0xff]  ;;  %v151_v40 = vld [vmem:[#allocation8 + $0x60] sm:$0xff]  ;;  %v137_v44 = vld [vmem:[#allocation7 + $0x70] sm:$0xff] }
  0x87   :  { %2234 = vmatprep.subr.bf16.mxu1 %v3396_v0  ;;  %v152_v41 = vld [vmem:[#allocation8 + $0x68] sm:$0xff]  ;;  %v2999_v42 = vpack.c.bf16 %v136_v39, %v135_v38  ;;  %v138_v45 = vld [vmem:[#allocation7 + $0x78] sm:$0xff]  ;;  %v153_v46 = vld [vmem:[#allocation8 + $0x70] sm:$0xff]  ;;  %v422_v39 = vlaneseq }
  0x88   :  { %v3003_v43 = vpack.c.bf16 %v152_v41, %v151_v40  ;;  %v154_v47 = vld [vmem:[#allocation8 + $0x78] sm:$0xff]  ;;  %v3007_v48 = vpack.c.bf16 %v138_v45, %v137_v44  ;;  %v155_v50 = vld [vmem:[#allocation10] sm:$0xff]  ;;  %v156_v51 = vld [vmem:[#allocation10 + $0x8] sm:$0xff] }
  0x89   :  { %2212 = vmatpush3.bf16.msra.mxu0 %v2967_v18  ;;  %v3011_v49 = vpack.c.bf16 %v154_v47, %v153_v46  ;;  %v3015_v52 = vld [vmem:[#allocation2] sm:$0xff]  ;;  %v3017_v53 = vpack.c.bf16 %v156_v51, %v155_v50  ;;  %v3021_v54 = vld [vmem:[#allocation5] sm:$0xff]  ;;  %v159_v58 = vld [vmem:[#allocation10 + $0x20] sm:$0xff]  ;;  %v3072_v40 = vand.u32 127, %v422_v39 }
  0x8a   :  { %2236 = vmatpush3.bf16.msra.mxu1 %v2971_v19  ;;  %2213 = vmatprep.subr.bf16.mxu0 %v3396_v0  ;;  %v157_v55 = vld [vmem:[#allocation10 + $0x10] sm:$0xff]  ;;  %v158_v56 = vld [vmem:[#allocation10 + $0x18] sm:$0xff]  ;;  %v160_v59 = vld [vmem:[#allocation10 + $0x28] sm:$0xff]  ;;  %v343_v20 = vadd.f32 %v3021_v54, %v3015_v52 }
  0x8b   :  { %2237 = vmatprep.subr.bf16.mxu1 %v3396_v0  ;;  %v3027_v57 = vpack.c.bf16 %v158_v56, %v157_v55  ;;  %v3035_v60 = vpack.c.bf16 %v160_v59, %v159_v58  ;;  %v161_v61 = vld [vmem:[#allocation10 + $0x30] sm:$0xff]  ;;  %v162_v62 = vld [vmem:[#allocation10 + $0x38] sm:$0xff]  ;;  %v163_v2 = vld [vmem:[#allocation10 + $0x40] sm:$0xff] }
  0x8c   :  { %v3039_v63 = vpack.c.bf16 %v162_v62, %v161_v61  ;;  %v164_v3 = vld [vmem:[#allocation10 + $0x48] sm:$0xff]  ;;  %v165_v6 = vld [vmem:[#allocation10 + $0x50] sm:$0xff]  ;;  %v166_v7 = vld [vmem:[#allocation10 + $0x58] sm:$0xff] }
  0x8d   :  { %2215 = vmatpush3.bf16.msra.mxu0 %v2975_v24  ;;  %v3043_v4 = vpack.c.bf16 %v164_v3, %v163_v2  ;;  %v3047_v8 = vpack.c.bf16 %v166_v7, %v165_v6  ;;  %v167_v10 = vld [vmem:[#allocation10 + $0x60] sm:$0xff]  ;;  %v168_v11 = vld [vmem:[#allocation10 + $0x68] sm:$0xff]  ;;  %v169_v15 = vld [vmem:[#allocation10 + $0x70] sm:$0xff] }
  0x8e   :  { %2239 = vmatpush3.bf16.msra.mxu1 %v2979_v25  ;;  %2216 = vmatprep.subr.bf16.mxu0 %v3396_v0  ;;  %v3051_v14 = vpack.c.bf16 %v168_v11, %v167_v10  ;;  %v170_v16 = vld [vmem:[#allocation10 + $0x78] sm:$0xff]  ;;  %v171_v47 = vld [vmem:[#allocation11] sm:$0xff]  ;;  %v172_v50 = vld [vmem:[#allocation11 + $0x8] sm:$0xff] }
  0x8f   :  { %2240 = vmatprep.subr.bf16.mxu1 %v3396_v0  ;;  %v3055_v17 = vpack.c.bf16 %v170_v16, %v169_v15  ;;  %v187_v51 = vld [vmem:[#allocation13] sm:$0xff]  ;;  %v3081_v55 = vpack.c.bf16 %v172_v50, %v171_v47  ;;  %v188_v56 = vld [vmem:[#allocation13 + $0x8] sm:$0xff]  ;;  %v173_v58 = vld [vmem:[#allocation11 + $0x10] sm:$0xff] }
  0x90   :  { %v174_v59 = vld [vmem:[#allocation11 + $0x18] sm:$0xff]  ;;  %v3083_v61 = vpack.c.bf16 %v188_v56, %v187_v51  ;;  %v189_v62 = vld [vmem:[#allocation13 + $0x10] sm:$0xff]  ;;  %v175_v7 = vld [vmem:[#allocation11 + $0x20] sm:$0xff] }
  0x91   :  { %2218 = vmatpush3.bf16.msra.mxu0 %v2983_v30  ;;  %v190_v2 = vld [vmem:[#allocation13 + $0x18] sm:$0xff]  ;;  %v3086_v3 = vpack.c.bf16 %v174_v59, %v173_v58  ;;  %v176_v10 = vld [vmem:[#allocation11 + $0x28] sm:$0xff]  ;;  %v191_v11 = vld [vmem:[#allocation13 + $0x20] sm:$0xff] }
  0x92   :  { %2242 = vmatpush3.bf16.msra.mxu1 %v2987_v31  ;;  %2219 = vmatprep.subr.bf16.mxu0 %v3396_v0  ;;  %v3090_v6 = vpack.c.bf16 %v190_v2, %v189_v62  ;;  %v192_v15 = vld [vmem:[#allocation13 + $0x28] sm:$0xff]  ;;  %v3094_v16 = vpack.c.bf16 %v176_v10, %v175_v7  ;;  %v182_v47 = vld [vmem:[#allocation11 + $0x58] sm:$0xff]  ;;  %v197_v50 = vld [vmem:[#allocation13 + $0x50] sm:$0xff] }
  0x93   :  { %2243 = vmatprep.subr.bf16.mxu1 %v3396_v0  ;;  %v198_v51 = vld [vmem:[#allocation13 + $0x58] sm:$0xff]  ;;  %v183_v59 = vld [vmem:[#allocation11 + $0x60] sm:$0xff]  ;;  %v184_v62 = vld [vmem:[#allocation11 + $0x68] sm:$0xff] }
  0x94   :  { %v3122_v58 = vpack.c.bf16 %v198_v51, %v197_v50  ;;  %v199_v2 = vld [vmem:[#allocation13 + $0x60] sm:$0xff]  ;;  %v200_v7 = vld [vmem:[#allocation13 + $0x68] sm:$0xff]  ;;  %v3126_v10 = vpack.c.bf16 %v184_v62, %v183_v59  ;;  %v2801_v59 = vmov 1.0  }
  0x95   :  { %2221 = vmatpush3.bf16.msra.mxu0 %v2991_v36 }
  0x96   :  { %2245 = vmatpush3.bf16.msra.mxu1 %v2995_v37  ;;  %2222 = vmatprep.subr.bf16.mxu0 %v3396_v0 }
  0x97   :  { %2246 = vmatprep.subr.bf16.mxu1 %v3396_v0 }
  0x99   :  { %2224 = vmatpush3.bf16.msra.mxu0 %v2999_v42 }
  0x9a   :  { %2248 = vmatpush3.bf16.msra.mxu1 %v3003_v43  ;;  %2225 = vmatprep.subr.bf16.mxu0 %v3396_v0 }
  0x9b   :  { %2249 = vmatprep.subr.bf16.mxu1 %v3396_v0 }
  0x9d   :  { %2227 = vmatpush3.bf16.msra.mxu0 %v3007_v48 }
  0x9e   :  { %2251 = vmatpush3.bf16.msra.mxu1 %v3011_v49  ;;  %2252 = vmatprep.subr.bf16.mxu0 %v3396_v0 }
  0x9f   :  { %2276 = vmatprep.subr.bf16.mxu1 %v3396_v0 }
  0xa0   :  { %1712 = vmatmul.mubr.f32.vlgmr.msra.gmra.mrb[0].mxu0 %v3015_v52 }
  0xa1   :  { %1747 = vmatmul.mubr.f32.vlgmr.msra.gmra.mrb[0].mxu1 %v3021_v54  ;;  %2254 = vmatpush3.bf16.msra.mxu0 %v3017_v53 }
  0xa2   :  { %2255 = vmatprep.subr.bf16.mxu0 %v3396_v0  ;;  %1781 = vmatprep.mubr.msk.f32.mxu0 %vm2799_vm0, %v2800_v1 }
  0xa3   :  { %1816 = vmatprep.mubr.msk.f32.mxu1 %vm2799_vm0, %v2800_v1  ;;  %2278 = vmatpush3.bf16.msra.mxu1 %v3081_v55 }
  0xa4   :  { %2279 = vmatprep.subr.bf16.mxu1 %v3396_v0 }
  0xa5   :  { %2257 = vmatpush3.bf16.msra.mxu0 %v3027_v57 }
  0xa6   :  { %2258 = vmatprep.subr.bf16.mxu0 %v3396_v0 }
  0xa7   :  { %2281 = vmatpush3.bf16.msra.mxu1 %v3086_v3 }
  0xa8   :  { %2282 = vmatprep.subr.bf16.mxu1 %v3396_v0 }
  0xa9   :  { %2260 = vmatpush3.bf16.msra.mxu0 %v3035_v60 }
  0xaa   :  { %2261 = vmatprep.subr.bf16.mxu0 %v3396_v0 }
  0xab   :  { %2284 = vmatpush3.bf16.msra.mxu1 %v3094_v16 }
  0xac   :  { %2285 = vmatprep.subr.bf16.mxu1 %v3396_v0 }
  0xad   :  { %2263 = vmatpush3.bf16.msra.mxu0 %v3039_v63 }
  0xae   :  { %2264 = vmatprep.subr.bf16.mxu0 %v3396_v0 }
  0xb1   :  { %2266 = vmatpush3.bf16.msra.mxu0 %v3043_v4 }
  0xb2   :  { %2267 = vmatprep.subr.bf16.mxu0 %v3396_v0 }
  0xb5   :  { %2269 = vmatpush3.bf16.msra.mxu0 %v3047_v8 }
  0xb6   :  { %2270 = vmatprep.subr.bf16.mxu0 %v3396_v0 }
  0xb9   :  { %2272 = vmatpush3.bf16.msra.mxu0 %v3051_v14 }
  0xba   :  { %2273 = vmatprep.subr.bf16.mxu0 %v3396_v0 }
  0xbd   :  { %2275 = vmatpush3.bf16.msra.mxu0 %v3055_v17 }
  0xbe   :  { %2300 = vmatprep.subr.bf16.mxu0 %v3396_v0 }
  0xc0   :  { %1782 = vmatmul.mubr.f32.vlgmr.msra.gmra.mrb[2].mxu0 %v343_v20  ;;  %v3098_v20 = vpack.c.bf16 %v192_v15, %v191_v11  ;;  %v3130_v11 = vpack.c.bf16 %v200_v7, %v199_v2 }
  0xc1   :  { %1851 = vmatprep.mubr.msk.f32.mxu0 %vm2799_vm0, %v2800_v1  ;;  %2302 = vmatpush3.bf16.msra.mxu0 %v3083_v61 }
  0xc2   :  { %2303 = vmatprep.subr.bf16.mxu0 %v3396_v0 }
  0xc5   :  { %2305 = vmatpush3.bf16.msra.mxu0 %v3090_v6 }
  0xc6   :  { %2306 = vmatprep.subr.bf16.mxu0 %v3396_v0 }
  0xc9   :  { %2308 = vmatpush3.bf16.msra.mxu0 %v3098_v20 }
  0xca   :  { %2309 = vmatprep.subr.bf16.mxu0 %v3396_v0 }
 0x173   :  { %v269_v21 = vpop.f32.mrb[0].mxu0 }
 0x174   :  { %v1713_v22 = vpop.f32.mrb[1].mxu0  ;;  %v339_v23 = vpop.f32.mrb[0].mxu1 }
 0x175   :  { %v3064_v26 = vadd.f32 %v339_v23, %v269_v21  ;;  %v1748_v27 = vpop.f32.mrb[1].mxu1  ;;  %v178_v22 = vld [vmem:[#allocation11 + $0x38] sm:$0xff] }
 0x176   :  { %v194_v27 = vld [vmem:[#allocation13 + $0x38] sm:$0xff] }
 0x177   :  { %v417_v34 = vmul.f32 %v3064_v26, %v3064_v26 }
 0x193   :  { %v410_v28 = vpop.f32.mrb[2].mxu0 }
 0x194   :  { %v415_v29 = vsub.f32 %v410_v28, %v269_v21  ;;  %v1783_v32 = vpop.f32.mrb[3].mxu0  ;;  %v177_v21 = vld [vmem:[#allocation11 + $0x30] sm:$0xff] }
 0x195   :  { %v3102_v28 = vpack.c.bf16 %v178_v22, %v177_v21  ;;  %v179_v32 = vld [vmem:[#allocation11 + $0x40] sm:$0xff] }
 0x196   :  { %v3066_v33 = vadd.f32 %v415_v29, %v339_v23  ;;  %v193_v23 = vld [vmem:[#allocation13 + $0x30] sm:$0xff] }
 0x197   :  { %v3106_v29 = vpack.c.bf16 %v194_v27, %v193_v23  ;;  %2287 = vmatpush3.bf16.msra.mxu1 %v3102_v28  ;;  %v185_v27 = vld [vmem:[#allocation11 + $0x70] sm:$0xff] }
 0x198   :  { %v418_v35 = vmul.f32 %v3066_v33, %v3066_v33  ;;  %2288 = vmatprep.subr.bf16.mxu1 %v3396_v0 }
 0x199   :  { %2311 = vmatpush3.bf16.msra.mxu0 %v3106_v29 }
 0x19a   :  { %v419_v38 = vadd.f32 %v418_v35, %v417_v34  ;;  %v180_v34 = vld [vmem:[#allocation11 + $0x48] sm:$0xff]  ;;  %v195_v35 = vld [vmem:[#allocation13 + $0x40] sm:$0xff]  ;;  %2312 = vmatprep.subr.bf16.mxu0 %v3396_v0 }
 0x19b   :  { %v3110_v39 = vpack.c.bf16 %v180_v34, %v179_v32  ;;  %v186_v32 = vld [vmem:[#allocation11 + $0x78] sm:$0xff]  ;;  %v201_v34 = vld [vmem:[#allocation13 + $0x70] sm:$0xff] }
 0x19c   :  { %420 = vmax.xlane.f32.xlu0 %v419_v38 }
 0x19d   :  { %2290 = vmatpush3.bf16.msra.mxu1 %v3110_v39 }
 0x19e   :  { %2291 = vmatprep.subr.bf16.mxu1 %v3396_v0 }
 0x229   :  { %v421_v41 = vpop.xlane.xlu0 %420 }
 0x22a   :  { %vm424_vm1 = vcmp.eq.f32.partialorder %v419_v38, %v421_v41  ;;  %v196_v38 = vld [vmem:[#allocation13 + $0x48] sm:$0xff] }
 0x22b   :  { %v3075_v44 = vsel %vm424_vm1, %v3072_v40, 128  ;;  %v3114_v41 = vpack.c.bf16 %v196_v38, %v195_v35  ;;  %v3139_v35 = vpack.c.bf16 %v186_v32, %v185_v27  ;;  %v202_v38 = vld [vmem:[#allocation13 + $0x78] sm:$0xff] }
 0x22c   :  { %v427_v45 = vshra.s32 %v3075_v44, 16  ;;  %v426_v15 = vand.u32 65535, %v3075_v44 }
 0x22d   :  { %2314 = vmatpush3.bf16.msra.mxu0 %v3114_v41 }
 0x22e   :  { %v3078_v46 = vcvt.s32.f32 %v427_v45  ;;  %v181_v45 = vld [vmem:[#allocation11 + $0x50] sm:$0xff]  ;;  %2315 = vmatprep.subr.bf16.mxu0 %v3396_v0  ;;  %v428_v22 = vcvt.s32.f32 %v426_v15 }
 0x22f   :  { %v3118_v56 = vpack.c.bf16 %v182_v47, %v181_v45  ;;  %v3141_v45 = vpack.c.bf16 %v202_v38, %v201_v34 }
 0x230   :  { %430 = vmin.xlane.f32.xlu0 %v3078_v46 }
 0x231   :  { %2293 = vmatpush3.bf16.msra.mxu1 %v3118_v56  ;;  %2317 = vmatpush3.bf16.msra.mxu0 %v3122_v58 }
 0x232   :  { %2294 = vmatprep.subr.bf16.mxu1 %v3396_v0  ;;  %2318 = vmatprep.subr.bf16.mxu0 %v3396_v0 }
 0x235   :  { %2296 = vmatpush3.bf16.msra.mxu1 %v3126_v10  ;;  %2320 = vmatpush3.bf16.msra.mxu0 %v3130_v11 }
 0x236   :  { %2297 = vmatprep.subr.bf16.mxu1 %v3396_v0  ;;  %2321 = vmatprep.subr.bf16.mxu0 %v3396_v0 }
 0x239   :  { %2299 = vmatpush3.bf16.msra.mxu1 %v3139_v35  ;;  %2323 = vmatpush3.bf16.msra.mxu0 %v3141_v45 }
 0x23a   :  { %2324 = vmatprep.subr.bf16.mxu1 %v3396_v0  ;;  %2348 = vmatprep.subr.bf16.mxu0 %v3396_v0 }
 0x2bd   :  { %v431_v21 = vpop.xlane.xlu0 %430 }
 0x2be   :  { %vm432_vm2 = vcmp.eq.f32.partialorder %v3078_v46, %v431_v21  ;;  %v437_v44 = vcvt.f32.s32 %v431_v21 }
 0x2bf   :  { %v433_v23 = vsel %vm432_vm2, %v428_v22, inf }
 0x2c0   :  { %434 = vmin.xlane.f32.xlu1 %v433_v23  ;;  %v438_v47 = vshll.u32 %v437_v44, 16 }
 0x34d   :  { %v435_v46 = vpop.xlane.xlu1 %434 }
 0x34e   :  { %v436_v50 = vcvt.f32.s32 %v435_v46 }
 0x350   :  { %v439_v51 = vadd.s32 %v438_v47, %v436_v50 }
 0x352   :  { %vm440_vm3 = vcmp.eq.s32.totalorder %v3072_v40, %v439_v51 }
 0x353   :  { %1817 = vmatmul.mubr.msk.f32.vlgmr.msra.gmra.mrb[2].mxu1 %vm440_vm3, %v2801_v59  ;;  %1852 = vmatmul.mubr.msk.f32.vlgmr.msra.gmra.mrb[4].mxu0 %vm440_vm3, %v2801_v59  ;;  %v1415_v62 = vsel %vm440_vm3, 1.0, %v2800_v1 }
 0x354   :  { %v446_v2 = vmul.f32 %v1415_v62, %v3066_v33  ;;  %v443_v7 = vmul.f32 %v1415_v62, %v3064_v26  ;;  %2326 = vmatpush3.bf16.msra.mxu1 %v2954_v5  ;;  %2350 = vmatpush3.bf16.msra.mxu0 %v2956_v9 }
 0x355   :  { %2327 = vmatprep.subr.bf16.mxu1 %v3396_v0  ;;  %2351 = vmatprep.subr.bf16.mxu0 %v3396_v0 }
 0x356   :  { %447 = vadd.xlane.f32.xlu0 %v446_v2  ;;  %444 = vadd.xlane.f32.xlu1 %v443_v7 }
 0x357   :  { %1886 = vmatprep.mubr.msk.f32.mxu1 %vm2799_vm0, %v2800_v1  ;;  %1921 = vmatprep.mubr.msk.f32.mxu0 %vm2799_vm0, %v2800_v1 }
 0x358   :  { %2329 = vmatpush3.bf16.msra.mxu1 %v2959_v12  ;;  %2353 = vmatpush3.bf16.msra.mxu0 %v2963_v13 }
 0x359   :  { %2330 = vmatprep.subr.bf16.mxu1 %v3396_v0  ;;  %2354 = vmatprep.subr.bf16.mxu0 %v3396_v0 }
 0x35c   :  { %2332 = vmatpush3.bf16.msra.mxu1 %v2967_v18  ;;  %2356 = vmatpush3.bf16.msra.mxu0 %v2971_v19 }
 0x35d   :  { %2333 = vmatprep.subr.bf16.mxu1 %v3396_v0  ;;  %2357 = vmatprep.subr.bf16.mxu0 %v3396_v0 }
 0x360   :  { %2335 = vmatpush3.bf16.msra.mxu1 %v2975_v24  ;;  %2359 = vmatpush3.bf16.msra.mxu0 %v2979_v25 }
 0x361   :  { %2336 = vmatprep.subr.bf16.mxu1 %v3396_v0  ;;  %2360 = vmatprep.subr.bf16.mxu0 %v3396_v0 }
 0x364   :  { %2338 = vmatpush3.bf16.msra.mxu1 %v2983_v30  ;;  %2362 = vmatpush3.bf16.msra.mxu0 %v2987_v31 }
 0x365   :  { %2339 = vmatprep.subr.bf16.mxu1 %v3396_v0  ;;  %2363 = vmatprep.subr.bf16.mxu0 %v3396_v0 }
 0x368   :  { %2341 = vmatpush3.bf16.msra.mxu1 %v2991_v36  ;;  %2365 = vmatpush3.bf16.msra.mxu0 %v2995_v37 }
 0x369   :  { %2342 = vmatprep.subr.bf16.mxu1 %v3396_v0  ;;  %2366 = vmatprep.subr.bf16.mxu0 %v3396_v0 }
 0x36c   :  { %2344 = vmatpush3.bf16.msra.mxu1 %v2999_v42  ;;  %2368 = vmatpush3.bf16.msra.mxu0 %v3003_v43 }
 0x36d   :  { %2345 = vmatprep.subr.bf16.mxu1 %v3396_v0  ;;  %2369 = vmatprep.subr.bf16.mxu0 %v3396_v0 }
 0x370   :  { %2347 = vmatpush3.bf16.msra.mxu1 %v3007_v48  ;;  %2371 = vmatpush3.bf16.msra.mxu0 %v3011_v49 }
 0x371   :  { %2372 = vmatprep.subr.bf16.mxu1 %v3396_v0  ;;  %2396 = vmatprep.subr.bf16.mxu0 %v3396_v0 }
 0x3e3   :  { %v448_v26 = vpop.xlane.xlu0 %447  ;;  %v445_v33 = vpop.xlane.xlu1 %444 }
 0x426   :  { %v515_v15 = vpop.f32.mrb[2].mxu1  ;;  %v585_v21 = vpop.f32.mrb[4].mxu0 }
 0x427   :  { %v589_v22 = vmul.f32 %v515_v15, %v445_v33  ;;  %v593_v23 = vmul.f32 %v515_v15, %v448_v26  ;;  %v590_v27 = vmul.f32 %v585_v21, %v448_v26  ;;  %v592_v32 = vmul.f32 %v585_v21, %v445_v33  ;;  %v1818_v34 = vpop.f32.mrb[3].mxu1  ;;  %v1853_v38 = vpop.f32.mrb[5].mxu0 }
 0x429   :  { %v591_v44 = vsub.f32 %v589_v22, %v590_v27  ;;  %v594_v46 = vadd.f32 %v593_v23, %v592_v32 }
 0x42b   :  { %v3190_v47 = vsub.f32 %v3015_v52, %v591_v44  ;;  %v3193_v50 = vsub.f32 %v3021_v54, %v594_v46 }
 0x42d   :  { %1887 = vmatmul.mubr.f32.vlgmr.msra.gmra.mrb[4].mxu1 %v3190_v47  ;;  %1922 = vmatmul.mubr.f32.vlgmr.msra.gmra.mrb[6].mxu0 %v3193_v50  ;;  %v737_v52 = vadd.f32 %v3193_v50, %v3190_v47 }
 0x42e   :  { %2374 = vmatpush3.bf16.msra.mxu1 %v3017_v53  ;;  %1956 = vmatprep.mubr.msk.f32.mxu1 %vm2799_vm0, %v2800_v1 }
 0x42f   :  { %2375 = vmatprep.subr.bf16.mxu1 %v3396_v0  ;;  %2398 = vmatpush3.bf16.msra.mxu0 %v3081_v55 }
 0x430   :  { %2399 = vmatprep.subr.bf16.mxu0 %v3396_v0  ;;  %1991 = vmatprep.mubr.msk.f32.mxu0 %vm2799_vm0, %v2800_v1 }
 0x432   :  { %2377 = vmatpush3.bf16.msra.mxu1 %v3027_v57 }
 0x433   :  { %2378 = vmatprep.subr.bf16.mxu1 %v3396_v0  ;;  %2401 = vmatpush3.bf16.msra.mxu0 %v3086_v3 }
 0x434   :  { %2402 = vmatprep.subr.bf16.mxu0 %v3396_v0 }
 0x436   :  { %2380 = vmatpush3.bf16.msra.mxu1 %v3035_v60 }
 0x437   :  { %2381 = vmatprep.subr.bf16.mxu1 %v3396_v0  ;;  %2404 = vmatpush3.bf16.msra.mxu0 %v3094_v16 }
 0x438   :  { %2405 = vmatprep.subr.bf16.mxu0 %v3396_v0 }
 0x43a   :  { %2383 = vmatpush3.bf16.msra.mxu1 %v3039_v63 }
 0x43b   :  { %2384 = vmatprep.subr.bf16.mxu1 %v3396_v0  ;;  %2407 = vmatpush3.bf16.msra.mxu0 %v3102_v28 }
 0x43c   :  { %2408 = vmatprep.subr.bf16.mxu0 %v3396_v0 }
 0x43e   :  { %2386 = vmatpush3.bf16.msra.mxu1 %v3043_v4 }
 0x43f   :  { %2387 = vmatprep.subr.bf16.mxu1 %v3396_v0  ;;  %2410 = vmatpush3.bf16.msra.mxu0 %v3110_v39 }
 0x440   :  { %2411 = vmatprep.subr.bf16.mxu0 %v3396_v0 }
 0x442   :  { %2389 = vmatpush3.bf16.msra.mxu1 %v3047_v8 }
 0x443   :  { %2390 = vmatprep.subr.bf16.mxu1 %v3396_v0  ;;  %2413 = vmatpush3.bf16.msra.mxu0 %v3118_v56 }
 0x444   :  { %2414 = vmatprep.subr.bf16.mxu0 %v3396_v0 }
 0x446   :  { %2392 = vmatpush3.bf16.msra.mxu1 %v3051_v14 }
 0x447   :  { %2393 = vmatprep.subr.bf16.mxu1 %v3396_v0  ;;  %2416 = vmatpush3.bf16.msra.mxu0 %v3126_v10 }
 0x448   :  { %2417 = vmatprep.subr.bf16.mxu0 %v3396_v0 }
 0x44a   :  { %2395 = vmatpush3.bf16.msra.mxu1 %v3055_v17 }
 0x44b   :  { %2420 = vmatprep.subr.bf16.mxu1 %v3396_v0  ;;  %2419 = vmatpush3.bf16.msra.mxu0 %v3139_v35 }
 0x44c   :  { %2444 = vmatprep.subr.bf16.mxu0 %v3396_v0 }
 0x44d   :  { %1957 = vmatmul.mubr.f32.vlgmr.msra.gmra.mrb[6].mxu1 %v737_v52 }
 0x44e   :  { %2422 = vmatpush3.bf16.msra.mxu1 %v3083_v61  ;;  %2026 = vmatprep.mubr.msk.f32.mxu1 %vm2799_vm0, %v2800_v1 }
 0x44f   :  { %2423 = vmatprep.subr.bf16.mxu1 %v3396_v0 }
 0x452   :  { %2425 = vmatpush3.bf16.msra.mxu1 %v3090_v6 }
 0x453   :  { %2426 = vmatprep.subr.bf16.mxu1 %v3396_v0 }
 0x456   :  { %2428 = vmatpush3.bf16.msra.mxu1 %v3098_v20 }
 0x457   :  { %2429 = vmatprep.subr.bf16.mxu1 %v3396_v0 }
 0x45a   :  { %2431 = vmatpush3.bf16.msra.mxu1 %v3106_v29 }
 0x45b   :  { %2432 = vmatprep.subr.bf16.mxu1 %v3396_v0 }
 0x45e   :  { %2434 = vmatpush3.bf16.msra.mxu1 %v3114_v41 }
 0x45f   :  { %2435 = vmatprep.subr.bf16.mxu1 %v3396_v0 }
 0x462   :  { %2437 = vmatpush3.bf16.msra.mxu1 %v3122_v58 }
 0x463   :  { %2438 = vmatprep.subr.bf16.mxu1 %v3396_v0 }
 0x466   :  { %2440 = vmatpush3.bf16.msra.mxu1 %v3130_v11 }
 0x467   :  { %2441 = vmatprep.subr.bf16.mxu1 %v3396_v0 }
 0x46a   :  { %2443 = vmatpush3.bf16.msra.mxu1 %v3141_v45 }
 0x46b   :  { %2468 = vmatprep.subr.bf16.mxu1 %v3396_v0 }
 0x500   :  { %v663_v54 = vpop.f32.mrb[4].mxu1  ;;  %v733_v51 = vpop.f32.mrb[6].mxu0 }
 0x501   :  { %v808_v62 = vadd.f32 %v733_v51, %v663_v54  ;;  %v1888_v2 = vpop.f32.mrb[5].mxu1  ;;  %v1923_v7 = vpop.f32.mrb[7].mxu0 }
 0x503   :  { %v811_v22 = vmul.f32 %v808_v62, %v808_v62 }
 0x520   :  { %v804_v26 = vpop.f32.mrb[6].mxu1 }
 0x521   :  { %v809_v33 = vsub.f32 %v804_v26, %v663_v54  ;;  %v1958_v15 = vpop.f32.mrb[7].mxu1 }
 0x523   :  { %v810_v21 = vadd.f32 %v809_v33, %v733_v51 }
 0x525   :  { %v812_v23 = vmul.f32 %v810_v21, %v810_v21 }
 0x527   :  { %v813_v27 = vadd.f32 %v812_v23, %v811_v22 }
 0x529   :  { %814 = vmax.xlane.f32.xlu1 %v813_v27 }
 0x5b6   :  { %v815_v32 = vpop.xlane.xlu1 %814 }
 0x5b7   :  { %vm816_vm4 = vcmp.eq.f32.partialorder %v813_v27, %v815_v32 }
 0x5b8   :  { %v817_v34 = vsel %vm816_vm4, %v3072_v40, 128 }
 0x5b9   :  { %v819_v38 = vshra.s32 %v817_v34, 16  ;;  %v818_v46 = vand.u32 65535, %v817_v34 }
 0x5bb   :  { %v821_v44 = vcvt.s32.f32 %v819_v38  ;;  %v820_v0 = vcvt.s32.f32 %v818_v46 }
 0x5bd   :  { %822 = vmin.xlane.f32.xlu0 %v821_v44 }
 0x64a   :  { %v823_v52 = vpop.xlane.xlu0 %822 }
 0x64b   :  { %vm824_vm5 = vcmp.eq.f32.partialorder %v821_v44, %v823_v52  ;;  %v829_v54 = vcvt.f32.s32 %v823_v52 }
 0x64c   :  { %v825_v2 = vsel %vm824_vm5, %v820_v0, inf  ;;  %v3398_v0 = vmov 0.0|0.0  }
 0x64d   :  { %826 = vmin.xlane.f32.xlu1 %v825_v2  ;;  %v830_v51 = vshll.u32 %v829_v54, 16 }
 0x6da   :  { %v827_v7 = vpop.xlane.xlu1 %826 }
 0x6db   :  { %v828_v26 = vcvt.f32.s32 %v827_v7 }
 0x6dd   :  { %v831_v33 = vadd.s32 %v830_v51, %v828_v26 }
 0x6df   :  { %vm832_vm6 = vcmp.eq.s32.totalorder %v3072_v40, %v831_v33 }
 0x6e0   :  { %1992 = vmatmul.mubr.msk.f32.vlgmr.msra.gmra.mrb[8].mxu0 %vm832_vm6, %v2801_v59  ;;  %2027 = vmatmul.mubr.msk.f32.vlgmr.msra.gmra.mrb[8].mxu1 %vm832_vm6, %v2801_v59  ;;  %v1418_v15 = vsel %vm832_vm6, 1.0, %v2800_v1 }
 0x6e1   :  { %v838_v22 = vmul.f32 %v1418_v15, %v810_v21  ;;  %v835_v23 = vmul.f32 %v1418_v15, %v808_v62  ;;  %2446 = vmatpush3.bf16.msra.mxu0 %v2954_v5  ;;  %2470 = vmatpush3.bf16.msra.mxu1 %v2956_v9 }
 0x6e2   :  { %2447 = vmatprep.subr.bf16.mxu0 %v3398_v0  ;;  %2471 = vmatprep.subr.bf16.mxu1 %v3398_v0 }
 0x6e3   :  { %839 = vadd.xlane.f32.xlu1 %v838_v22  ;;  %836 = vadd.xlane.f32.xlu0 %v835_v23 }
 0x6e4   :  { %2061 = vmatprep.mubr.msk.f32.mxu0 %vm2799_vm0, %v2800_v1  ;;  %2096 = vmatprep.mubr.msk.f32.mxu1 %vm2799_vm0, %v2800_v1 }
 0x6e5   :  { %2449 = vmatpush3.bf16.msra.mxu0 %v2959_v12  ;;  %2473 = vmatpush3.bf16.msra.mxu1 %v2963_v13 }
 0x6e6   :  { %2450 = vmatprep.subr.bf16.mxu0 %v3398_v0  ;;  %2474 = vmatprep.subr.bf16.mxu1 %v3398_v0 }
 0x6e9   :  { %2452 = vmatpush3.bf16.msra.mxu0 %v2967_v18  ;;  %2476 = vmatpush3.bf16.msra.mxu1 %v2971_v19 }
 0x6ea   :  { %2453 = vmatprep.subr.bf16.mxu0 %v3398_v0  ;;  %2477 = vmatprep.subr.bf16.mxu1 %v3398_v0 }
 0x6ed   :  { %2455 = vmatpush3.bf16.msra.mxu0 %v2975_v24  ;;  %2479 = vmatpush3.bf16.msra.mxu1 %v2979_v25 }
 0x6ee   :  { %2456 = vmatprep.subr.bf16.mxu0 %v3398_v0  ;;  %2480 = vmatprep.subr.bf16.mxu1 %v3398_v0 }
 0x6f1   :  { %2458 = vmatpush3.bf16.msra.mxu0 %v2983_v30  ;;  %2482 = vmatpush3.bf16.msra.mxu1 %v2987_v31 }
 0x6f2   :  { %2459 = vmatprep.subr.bf16.mxu0 %v3398_v0  ;;  %2483 = vmatprep.subr.bf16.mxu1 %v3398_v0 }
 0x6f5   :  { %2461 = vmatpush3.bf16.msra.mxu0 %v2991_v36  ;;  %2485 = vmatpush3.bf16.msra.mxu1 %v2995_v37 }
 0x6f6   :  { %2462 = vmatprep.subr.bf16.mxu0 %v3398_v0  ;;  %2486 = vmatprep.subr.bf16.mxu1 %v3398_v0 }
 0x6f9   :  { %2464 = vmatpush3.bf16.msra.mxu0 %v2999_v42  ;;  %2488 = vmatpush3.bf16.msra.mxu1 %v3003_v43 }
 0x6fa   :  { %2465 = vmatprep.subr.bf16.mxu0 %v3398_v0  ;;  %2489 = vmatprep.subr.bf16.mxu1 %v3398_v0 }
 0x6fd   :  { %2467 = vmatpush3.bf16.msra.mxu0 %v3007_v48  ;;  %2491 = vmatpush3.bf16.msra.mxu1 %v3011_v49 }
 0x6fe   :  { %2492 = vmatprep.subr.bf16.mxu0 %v3398_v0  ;;  %2516 = vmatprep.subr.bf16.mxu1 %v3398_v0 }
 0x770   :  { %v840_v5 = vpop.xlane.xlu1 %839  ;;  %v837_v9 = vpop.xlane.xlu0 %836 }
 0x7b3   :  { %v907_v12 = vpop.f32.mrb[8].mxu0  ;;  %v977_v13 = vpop.f32.mrb[8].mxu1 }
 0x7b4   :  { %v981_v18 = vmul.f32 %v907_v12, %v837_v9  ;;  %v985_v19 = vmul.f32 %v907_v12, %v840_v5  ;;  %v982_v24 = vmul.f32 %v977_v13, %v840_v5  ;;  %v984_v25 = vmul.f32 %v977_v13, %v837_v9  ;;  %v1993_v30 = vpop.f32.mrb[9].mxu0  ;;  %v2028_v31 = vpop.f32.mrb[9].mxu1 }
 0x7b6   :  { %v983_v36 = vsub.f32 %v981_v18, %v982_v24  ;;  %v986_v37 = vadd.f32 %v985_v19, %v984_v25 }
 0x7b8   :  { %v3295_v42 = vsub.f32 %v3190_v47, %v983_v36  ;;  %v3298_v43 = vsub.f32 %v3193_v50, %v986_v37 }
 0x7ba   :  { %2062 = vmatmul.mubr.f32.vlgmr.msra.gmra.mrb[10].mxu0 %v3295_v42  ;;  %2097 = vmatmul.mubr.f32.vlgmr.msra.gmra.mrb[10].mxu1 %v3298_v43  ;;  %v1129_v48 = vadd.f32 %v3298_v43, %v3295_v42 }
 0x7bb   :  { %2494 = vmatpush3.bf16.msra.mxu0 %v3017_v53  ;;  %2131 = vmatprep.mubr.msk.f32.mxu0 %vm2799_vm0, %v2800_v1 }
 0x7bc   :  { %2495 = vmatprep.subr.bf16.mxu0 %v3398_v0  ;;  %2518 = vmatpush3.bf16.msra.mxu1 %v3081_v55 }
 0x7bd   :  { %2519 = vmatprep.subr.bf16.mxu1 %v3398_v0  ;;  %2166 = vmatprep.mubr.msk.f32.mxu1 %vm2799_vm0, %v2800_v1 }
 0x7bf   :  { %2497 = vmatpush3.bf16.msra.mxu0 %v3027_v57 }
 0x7c0   :  { %2498 = vmatprep.subr.bf16.mxu0 %v3398_v0  ;;  %2521 = vmatpush3.bf16.msra.mxu1 %v3086_v3 }
 0x7c1   :  { %2522 = vmatprep.subr.bf16.mxu1 %v3398_v0 }
 0x7c3   :  { %2500 = vmatpush3.bf16.msra.mxu0 %v3035_v60 }
 0x7c4   :  { %2501 = vmatprep.subr.bf16.mxu0 %v3398_v0  ;;  %2524 = vmatpush3.bf16.msra.mxu1 %v3094_v16 }
 0x7c5   :  { %2525 = vmatprep.subr.bf16.mxu1 %v3398_v0 }
 0x7c7   :  { %2503 = vmatpush3.bf16.msra.mxu0 %v3039_v63 }
 0x7c8   :  { %2504 = vmatprep.subr.bf16.mxu0 %v3398_v0  ;;  %2527 = vmatpush3.bf16.msra.mxu1 %v3102_v28 }
 0x7c9   :  { %2528 = vmatprep.subr.bf16.mxu1 %v3398_v0 }
 0x7cb   :  { %2506 = vmatpush3.bf16.msra.mxu0 %v3043_v4 }
 0x7cc   :  { %2507 = vmatprep.subr.bf16.mxu0 %v3398_v0  ;;  %2530 = vmatpush3.bf16.msra.mxu1 %v3110_v39 }
 0x7cd   :  { %2531 = vmatprep.subr.bf16.mxu1 %v3398_v0 }
 0x7cf   :  { %2509 = vmatpush3.bf16.msra.mxu0 %v3047_v8 }
 0x7d0   :  { %2510 = vmatprep.subr.bf16.mxu0 %v3398_v0  ;;  %2533 = vmatpush3.bf16.msra.mxu1 %v3118_v56 }
 0x7d1   :  { %2534 = vmatprep.subr.bf16.mxu1 %v3398_v0 }
 0x7d3   :  { %2512 = vmatpush3.bf16.msra.mxu0 %v3051_v14 }
 0x7d4   :  { %2513 = vmatprep.subr.bf16.mxu0 %v3398_v0  ;;  %2536 = vmatpush3.bf16.msra.mxu1 %v3126_v10 }
 0x7d5   :  { %2537 = vmatprep.subr.bf16.mxu1 %v3398_v0 }
 0x7d7   :  { %2515 = vmatpush3.bf16.msra.mxu0 %v3055_v17 }
 0x7d8   :  { %2540 = vmatprep.subr.bf16.mxu0 %v3398_v0  ;;  %2539 = vmatpush3.bf16.msra.mxu1 %v3139_v35 }
 0x7da   :  { %2132 = vmatmul.mubr.f32.vlgmr.msra.gmra.mrb[12].mxu0 %v1129_v48 }
 0x7db   :  { %2542 = vmatpush3.bf16.msra.mxu0 %v3083_v61  ;;  %2201 = vmatprep.mubr.msk.f32.mxu0 %vm2799_vm0, %v2800_v1 }
 0x7dc   :  { %2543 = vmatprep.subr.bf16.mxu0 %v3398_v0 }
 0x7df   :  { %2545 = vmatpush3.bf16.msra.mxu0 %v3090_v6 }
 0x7e0   :  { %2546 = vmatprep.subr.bf16.mxu0 %v3398_v0 }
 0x7e3   :  { %2548 = vmatpush3.bf16.msra.mxu0 %v3098_v20 }
 0x7e4   :  { %2549 = vmatprep.subr.bf16.mxu0 %v3398_v0 }
 0x7e7   :  { %2551 = vmatpush3.bf16.msra.mxu0 %v3106_v29 }
 0x7e8   :  { %2552 = vmatprep.subr.bf16.mxu0 %v3398_v0 }
 0x7eb   :  { %2554 = vmatpush3.bf16.msra.mxu0 %v3114_v41 }
 0x7ec   :  { %2555 = vmatprep.subr.bf16.mxu0 %v3398_v0 }
 0x7ef   :  { %2557 = vmatpush3.bf16.msra.mxu0 %v3122_v58 }
 0x7f0   :  { %2558 = vmatprep.subr.bf16.mxu0 %v3398_v0 }
 0x7f3   :  { %2560 = vmatpush3.bf16.msra.mxu0 %v3130_v11 }
 0x7f4   :  { %2561 = vmatprep.subr.bf16.mxu0 %v3398_v0 }
 0x7f7   :  { %2563 = vmatpush3.bf16.msra.mxu0 %v3141_v45 }
 0x88d   :  { %v1055_v49 = vpop.f32.mrb[10].mxu0  ;;  %v1125_v53 = vpop.f32.mrb[10].mxu1 }
 0x88e   :  { %v1200_v57 = vadd.f32 %v1125_v53, %v1055_v49  ;;  %v2063_v60 = vpop.f32.mrb[11].mxu0  ;;  %v2098_v63 = vpop.f32.mrb[11].mxu1 }
 0x890   :  { %v1203_v55 = vmul.f32 %v1200_v57, %v1200_v57 }
 0x8ad   :  { %v1196_v4 = vpop.f32.mrb[12].mxu0 }
 0x8ae   :  { %v1201_v8 = vsub.f32 %v1196_v4, %v1055_v49  ;;  %v2133_v14 = vpop.f32.mrb[13].mxu0 }
 0x8b0   :  { %v1202_v17 = vadd.f32 %v1201_v8, %v1125_v53 }
 0x8b2   :  { %v1204_v61 = vmul.f32 %v1202_v17, %v1202_v17 }
 0x8b4   :  { %v1205_v3 = vadd.f32 %v1204_v61, %v1203_v55 }
 0x8b6   :  { %1206 = vmax.xlane.f32.xlu0 %v1205_v3 }
 0x943   :  { %v1207_v6 = vpop.xlane.xlu0 %1206 }
 0x944   :  { %vm1208_vm7 = vcmp.eq.f32.partialorder %v1205_v3, %v1207_v6 }
 0x945   :  { %v1209_v16 = vsel %vm1208_vm7, %v3072_v40, 128 }
 0x946   :  { %v1211_v20 = vshra.s32 %v1209_v16, 16  ;;  %v1210_v29 = vand.u32 65535, %v1209_v16 }
 0x948   :  { %v1213_v28 = vcvt.s32.f32 %v1211_v20  ;;  %v1212_v41 = vcvt.s32.f32 %v1210_v29 }
 0x94a   :  { %1214 = vmin.xlane.f32.xlu1 %v1213_v28 }
 0x9d7   :  { %v1215_v39 = vpop.xlane.xlu1 %1214 }
 0x9d8   :  { %vm1216_vm8 = vcmp.eq.f32.partialorder %v1213_v28, %v1215_v39  ;;  %v1221_v58 = vcvt.f32.s32 %v1215_v39 }
 0x9d9   :  { %v1217_v56 = vsel %vm1216_vm8, %v1212_v41, inf }
 0x9da   :  { %1218 = vmin.xlane.f32.xlu0 %v1217_v56  ;;  %v1222_v11 = vshll.u32 %v1221_v58, 16 }
 0xa67   :  { %v1219_v10 = vpop.xlane.xlu0 %1218 }
 0xa68   :  { %v1220_v35 = vcvt.f32.s32 %v1219_v10 }
 0xa6a   :  { %v1223_v45 = vadd.s32 %v1222_v11, %v1220_v35 }
 0xa6c   :  { %vm1224_vm9 = vcmp.eq.s32.totalorder %v3072_v40, %v1223_v45 }
 0xa6d   :  { %2167 = vmatmul.mubr.msk.f32.vlgmr.msra.gmra.mrb[12].mxu1 %vm1224_vm9, %v2801_v59  ;;  %2202 = vmatmul.mubr.msk.f32.vlgmr.msra.gmra.mrb[14].mxu0 %vm1224_vm9, %v2801_v59  ;;  %v1421_v47 = vsel %vm1224_vm9, 1.0, %v2800_v1 }
 0xa6e   :  { %v1230_v50 = vmul.f32 %v1421_v47, %v1202_v17  ;;  %v1227_v62 = vmul.f32 %v1421_v47, %v1200_v57 }
 0xa70   :  { %1231 = vadd.xlane.f32.xlu0 %v1230_v50  ;;  %1228 = vadd.xlane.f32.xlu1 %v1227_v62 }
 0xafd   :  { %v1232_v21 = vpop.xlane.xlu0 %1231  ;;  %v1229_v27 = vpop.xlane.xlu1 %1228 }
 0xb40   :  { %v1299_v32 = vpop.f32.mrb[12].mxu1  ;;  %v1369_v34 = vpop.f32.mrb[14].mxu0 }
 0xb41   :  { %v1373_v38 = vmul.f32 %v1299_v32, %v1229_v27  ;;  %v1377_v44 = vmul.f32 %v1299_v32, %v1232_v21  ;;  %v1374_v46 = vmul.f32 %v1369_v34, %v1232_v21  ;;  %v1376_v52 = vmul.f32 %v1369_v34, %v1229_v27  ;;  %v2168_v2 = vpop.f32.mrb[13].mxu1  ;;  %v2203_v40 = vpop.f32.mrb[15].mxu0 }
 0xb43   :  { %v1375_v54 = vsub.f32 %v1373_v38, %v1374_v46  ;;  %v1378_v59 = vadd.f32 %v1377_v44, %v1376_v52 }
 0xb45   :  { %v1379_v1 = vsub.f32 %v3295_v42, %v1375_v54  ;;  %v1380_v7 = vsub.f32 %v3298_v43, %v1378_v59 }
 0xb47   :  { %1381 = vst [vmem:[#allocation14] sm:$0xff] %v1379_v1  ;;  %1382 = vst [vmem:[#allocation15] sm:$0xff] %v1380_v7 }
 0xb48   :  { %2744 = shalt.err (!%p2741_p4)
}
 0xb49   :  { %s2745_s22 = scalar_lea.hbm %s3394_s7, 128 }
 0xb4a   :  { %p2746_p5 = scmp.ne.s32.totalorder %s3394_s7, %s2745_s22  ;;  %p2749_p6 = scmp.lt.u32.totalorder %s2745_s22, %s3394_s7 }
 0xb4c   :  { %p2751_p7 = pnand %p2749_p6, %p2746_p5 }
 0xb4e   :  { %2754 = shalt.err (!%p2751_p7)
}
 0xb4f   :  { %1392 = dma.vmem_to_hbm [thread:$0]  %s1390_s28, 128, %s3394_s7, [#allocation4]  }
 0xb50   :  { %s2755_s9 = scalar_lea.vmem %s1400_s0, 128  ;;  %p2760_p9 = scmp.lt.s32.totalorder %s1400_s0, %s1400_s0 }
 0xb51   :  { %p2756_p8 = scmp.ne.s32.totalorder %s1400_s0, %s2755_s9  ;;  %p2761_p10 = scmp.lt.s32.totalorder %s2755_s9, %s2755_s9 }
 0xb53   :  { %p2762_p11 = por %p2761_p10, %p2760_p9 }
 0xb55   :  { %p2763_p12 = pnand %p2762_p11, %p2756_p8 }
 0xb57   :  { %2766 = shalt.err (!%p2763_p12)
}
 0xb58   :  { %s2767_s23 = scalar_lea.hbm %s3395_s8, 128 }
 0xb59   :  { %p2768_p13 = scmp.ne.s32.totalorder %s3395_s8, %s2767_s23  ;;  %p2771_p0 = scmp.lt.u32.totalorder %s2767_s23, %s3395_s8 }
 0xb5b   :  { %p2773_p1 = pnand %p2771_p0, %p2768_p13 }
 0xb5d   :  { %2776 = shalt.err (!%p2773_p1)
}
 0xb5e   :  { %1402 = dma.vmem_to_hbm [thread:$0]  %s1400_s0, 128, %s3395_s8, [#allocation16]  }
 0xb5f   :  { %2785 = dma.done.wait [#allocation4], 128  }
 0xb60   :  { %2786 = vsyncadd [#allocation4], 4294967168 }
 0xb61   :  { %2787 = dma.done.wait [#allocation16], 128  }
 0xb62   :  { %2788 = vsyncadd [#allocation16], 4294967168 }
 0xb63   :  { %1409 = vsyncpa [#allocation3], 1 }
 0xb64   :  { %1410 = vsyncpa [#allocation6], 1 }
 0xb65   :  { %1411 = vsyncpa [#allocation9], 1 }
 0xb66   :  { %1412 = vsyncpa [#allocation12], 1 }
 0xb67   :  { %1413 = vsyncpa [#allocation4], 1 }
 0xb68   :  { %1414 = vsyncpa [#allocation16], 1 }

// kernel: tpu_custom_call.1
= control target key start
LH: loop header
LB: loop body
LE: loop exit
PB: predicated region body
PF: predicated region fallthrough
CT: control target
= control target key end

     0   :  { %14 = vsyncpa [#allocation3], 0  ;;  %s3387_s0 = inlined_call_operand.hbm [shape: f32[8,128], index: 0, kind: input, shape index: {}]   ;;  %s3388_s1 = inlined_call_operand.hbm [shape: f32[8,128], index: 1, kind: input, shape index: {}]   ;;  %s3389_s2 = inlined_call_operand.hbm [shape: f32[128,128], index: 2, kind: input, shape index: {}]   ;;  %s3390_s3 = inlined_call_operand.hbm [shape: f32[128,128], index: 3, kind: input, shape index: {}]   ;;  %s3391_s4 = inlined_call_operand.hbm [shape: f32[128,128], index: 4, kind: input, shape index: {}]   ;;  %s3392_s5 = inlined_call_operand.hbm [shape: f32[128,128], index: 5, kind: input, shape index: {}]   ;;  %s3393_s6 = inlined_call_operand.hbm [shape: f32[128,128], index: 6, kind: input, shape index: {}]   ;;  %s3394_s7 = inlined_call_operand.hbm [shape: f32[8,128], index: 7, kind: output, shape index: {0}]   ;;  %s3395_s8 = inlined_call_operand.hbm [shape: f32[8,128], index: 8, kind: output, shape index: {1}]  }
   0x1   :  { %15 = vsyncpa [#allocation6], 0 }
   0x2   :  { %16 = vsyncpa [#allocation9], 0 }
   0x3   :  { %17 = vsyncpa [#allocation12], 0 }
   0x4   :  { %18 = vsyncpa [#allocation4], 0 }
   0x5   :  { %19 = vsyncpa [#allocation16], 0  ;;  %s2789_s27 = smov [#allocation5]   ;;  %s2579_s9 = scalar_lea.hbm %s3388_s1, 128 }
   0x6   :  { %s36_s28 = sshll.u32 %s2789_s27, 4  ;;  %p2580_p0 = scmp.ne.s32.totalorder %s3388_s1, %s2579_s9  ;;  %s37_s28 = int_to_ptr.vmem [resolvable:$true] %s36_s28 }
   0x7   :  { %p2583_p1 = scmp.lt.u32.totalorder %s2579_s9, %s3388_s1 }
   0x9   :  { %p2585_p2 = pnand %p2583_p1, %p2580_p0 }
   0xb   :  { %2588 = shalt.err (!%p2585_p2)
}
   0xc   :  { %s2589_s14 = scalar_lea.vmem %s37_s28, 128  ;;  %p2594_p4 = scmp.lt.s32.totalorder %s37_s28, %s37_s28 }
   0xd   :  { %p2590_p3 = scmp.ne.s32.totalorder %s37_s28, %s2589_s14  ;;  %p2595_p5 = scmp.lt.s32.totalorder %s2589_s14, %s2589_s14 }
   0xf   :  { %p2596_p6 = por %p2595_p5, %p2594_p4 }
  0x11   :  { %p2597_p7 = pnand %p2596_p6, %p2590_p3 }
  0x13   :  { %2600 = shalt.err (!%p2597_p7)
}
  0x14   :  { %39 = dma.hbm_to_vmem [thread:$0]  %s3388_s1, 128, %s37_s28, [#allocation6]  }
  0x15   :  { %s2790_s17 = smov [#allocation8]   ;;  %s2791_s19 = smov [#allocation11]  }
  0x16   :  { %s57_s18 = sshll.u32 %s2790_s17, 4  ;;  %s81_s20 = sshll.u32 %s2791_s19, 4  ;;  %s58_s18 = int_to_ptr.vmem [resolvable:$true] %s57_s18  ;;  %s82_s20 = int_to_ptr.vmem [resolvable:$true] %s81_s20 }
  0x17   :  { %s2601_s23 = scalar_lea.hbm %s3390_s3, 2048 }
  0x18   :  { %p2602_p8 = scmp.ne.s32.totalorder %s3390_s3, %s2601_s23  ;;  %p2605_p9 = scmp.lt.u32.totalorder %s2601_s23, %s3390_s3 }
  0x1a   :  { %p2607_p10 = pnand %p2605_p9, %p2602_p8 }
  0x1c   :  { %2610 = shalt.err (!%p2607_p10)
}
  0x1d   :  { %s2611_s1 = scalar_lea.vmem %s58_s18, 2048  ;;  %p2616_p12 = scmp.lt.s32.totalorder %s58_s18, %s58_s18 }
  0x1e   :  { %p2612_p11 = scmp.ne.s32.totalorder %s58_s18, %s2611_s1  ;;  %p2617_p13 = scmp.lt.s32.totalorder %s2611_s1, %s2611_s1 }
  0x20   :  { %p2618_p0 = por %p2617_p13, %p2616_p12 }
  0x22   :  { %p2619_p1 = pnand %p2618_p0, %p2612_p11 }
  0x24   :  { %2622 = shalt.err (!%p2619_p1)
}
  0x25   :  { %s2792_s28 = smov 128   ;;  %s2793_s29 = smov 8  }
  0x26   :  { %63 = dma.hbm_to_vmem [thread:$0]  %s3390_s3, 2048, %s58_s18, [#allocation9], %s2792_s28, %s2792_s28, %s2793_s29  }
  0x27   :  { %s2623_s12 = scalar_lea.hbm %s3392_s5, 2048 }
  0x28   :  { %p2624_p2 = scmp.ne.s32.totalorder %s3392_s5, %s2623_s12  ;;  %p2627_p3 = scmp.lt.u32.totalorder %s2623_s12, %s3392_s5 }
  0x2a   :  { %p2629_p4 = pnand %p2627_p3, %p2624_p2 }
  0x2c   :  { %2632 = shalt.err (!%p2629_p4)
}
  0x2d   :  { %s2633_s17 = scalar_lea.vmem %s82_s20, 2048  ;;  %p2638_p6 = scmp.lt.s32.totalorder %s82_s20, %s82_s20 }
  0x2e   :  { %p2634_p5 = scmp.ne.s32.totalorder %s82_s20, %s2633_s17  ;;  %p2639_p7 = scmp.lt.s32.totalorder %s2633_s17, %s2633_s17 }
  0x30   :  { %p2640_p8 = por %p2639_p7, %p2638_p6 }
  0x32   :  { %p2641_p9 = pnand %p2640_p8, %p2634_p5 }
  0x34   :  { %2644 = shalt.err (!%p2641_p9)
}
  0x35   :  { %87 = dma.hbm_to_vmem [thread:$0]  %s3392_s5, 2048, %s82_s20, [#allocation12], %s2792_s28, %s2792_s28, %s2793_s29  }
  0x36   :  { %s2794_s19 = smov [#allocation2]   ;;  %s2795_s22 = smov [#allocation7]  }
  0x37   :  { %s26_s21 = sshll.u32 %s2794_s19, 4  ;;  %s45_s23 = sshll.u32 %s2795_s22, 4  ;;  %s27_s21 = int_to_ptr.vmem [resolvable:$true] %s26_s21  ;;  %s46_s23 = int_to_ptr.vmem [resolvable:$true] %s45_s23 }
  0x38   :  { %s2645_s26 = scalar_lea.hbm %s3387_s0, 128 }
  0x39   :  { %p2646_p10 = scmp.ne.s32.totalorder %s3387_s0, %s2645_s26  ;;  %p2649_p11 = scmp.lt.u32.totalorder %s2645_s26, %s3387_s0 }
  0x3b   :  { %p2651_p12 = pnand %p2649_p11, %p2646_p10 }
  0x3d   :  { %2654 = shalt.err (!%p2651_p12)
}
  0x3e   :  { %s2655_s5 = scalar_lea.vmem %s27_s21, 128  ;;  %p2660_p0 = scmp.lt.s32.totalorder %s27_s21, %s27_s21 }
  0x3f   :  { %p2656_p13 = scmp.ne.s32.totalorder %s27_s21, %s2655_s5  ;;  %p2661_p1 = scmp.lt.s32.totalorder %s2655_s5, %s2655_s5 }
  0x41   :  { %p2662_p2 = por %p2661_p1, %p2660_p0 }
  0x43   :  { %p2663_p3 = pnand %p2662_p2, %p2656_p13 }
  0x45   :  { %2666 = shalt.err (!%p2663_p3)
}
  0x46   :  { %29 = dma.hbm_to_vmem [thread:$0]  %s3387_s0, 128, %s27_s21, [#allocation3]  }
  0x47   :  { %s2667_s13 = scalar_lea.hbm %s3389_s2, 2048 }
  0x48   :  { %p2668_p4 = scmp.ne.s32.totalorder %s3389_s2, %s2667_s13  ;;  %p2671_p5 = scmp.lt.u32.totalorder %s2667_s13, %s3389_s2 }
  0x4a   :  { %p2673_p6 = pnand %p2671_p5, %p2668_p4 }
  0x4c   :  { %2676 = shalt.err (!%p2673_p6)
}
  0x4d   :  { %s2677_s3 = scalar_lea.vmem %s46_s23, 2048  ;;  %p2682_p8 = scmp.lt.s32.totalorder %s46_s23, %s46_s23 }
  0x4e   :  { %p2678_p7 = scmp.ne.s32.totalorder %s46_s23, %s2677_s3  ;;  %p2683_p9 = scmp.lt.s32.totalorder %s2677_s3, %s2677_s3 }
  0x50   :  { %p2684_p10 = por %p2683_p9, %p2682_p8 }
  0x52   :  { %p2685_p11 = pnand %p2684_p10, %p2678_p7 }
  0x54   :  { %2688 = shalt.err (!%p2685_p11)
}
  0x55   :  { %51 = dma.hbm_to_vmem [thread:$0]  %s3389_s2, 2048, %s46_s23, [#allocation6], %s2792_s28, %s2792_s28, %s2793_s29  }
  0x56   :  { %s2796_s19 = smov [#allocation10]   ;;  %s2797_s22 = smov [#allocation13]  }
  0x57   :  { %s69_s21 = sshll.u32 %s2796_s19, 4  ;;  %s93_s24 = sshll.u32 %s2797_s22, 4  ;;  %s70_s21 = int_to_ptr.vmem [resolvable:$true] %s69_s21  ;;  %s94_s24 = int_to_ptr.vmem [resolvable:$true] %s93_s24 }
  0x58   :  { %s2689_s27 = scalar_lea.hbm %s3391_s4, 2048 }
  0x59   :  { %p2690_p12 = scmp.ne.s32.totalorder %s3391_s4, %s2689_s27  ;;  %p2693_p13 = scmp.lt.u32.totalorder %s2689_s27, %s3391_s4 }
  0x5b   :  { %p2695_p0 = pnand %p2693_p13, %p2690_p12 }
  0x5d   :  { %2698 = shalt.err (!%p2695_p0)
}
  0x5e   :  { %s2699_s2 = scalar_lea.vmem %s70_s21, 2048  ;;  %p2704_p2 = scmp.lt.s32.totalorder %s70_s21, %s70_s21 }
  0x5f   :  { %p2700_p1 = scmp.ne.s32.totalorder %s70_s21, %s2699_s2  ;;  %p2705_p3 = scmp.lt.s32.totalorder %s2699_s2, %s2699_s2 }
  0x61   :  { %p2706_p4 = por %p2705_p3, %p2704_p2 }
  0x63   :  { %p2707_p5 = pnand %p2706_p4, %p2700_p1 }
  0x65   :  { %2710 = shalt.err (!%p2707_p5)
}
  0x66   :  { %75 = dma.hbm_to_vmem [thread:$0]  %s3391_s4, 2048, %s70_s21, [#allocation9], %s2792_s28, %s2792_s28, %s2793_s29  }
  0x67   :  { %s2711_s12 = scalar_lea.hbm %s3393_s6, 2048 }
  0x68   :  { %p2712_p6 = scmp.ne.s32.totalorder %s3393_s6, %s2711_s12  ;;  %p2715_p7 = scmp.lt.u32.totalorder %s2711_s12, %s3393_s6 }
  0x6a   :  { %p2717_p8 = pnand %p2715_p7, %p2712_p6 }
  0x6c   :  { %2720 = shalt.err (!%p2717_p8)
}
  0x6d   :  { %s2721_s17 = scalar_lea.vmem %s94_s24, 2048  ;;  %p2726_p10 = scmp.lt.s32.totalorder %s94_s24, %s94_s24 }
  0x6e   :  { %p2722_p9 = scmp.ne.s32.totalorder %s94_s24, %s2721_s17  ;;  %p2727_p11 = scmp.lt.s32.totalorder %s2721_s17, %s2721_s17 }
  0x70   :  { %p2728_p12 = por %p2727_p11, %p2726_p10 }
  0x72   :  { %p2729_p13 = pnand %p2728_p12, %p2722_p9 }
  0x74   :  { %2732 = shalt.err (!%p2729_p13)
}
  0x75   :  { %99 = dma.hbm_to_vmem [thread:$0]  %s3393_s6, 2048, %s94_s24, [#allocation12], %s2792_s28, %s2792_s28, %s2793_s29  }
  0x76   :  { %2777 = dma.done.wait [#allocation3], 128  }
  0x77   :  { %2778 = vsyncadd [#allocation3], 4294967168 }
  0x78   :  { %2779 = dma.done.wait [#allocation6], 2176  }
  0x79   :  { %2780 = vsyncadd [#allocation6], 4294965120 }
  0x7a   :  { %2781 = dma.done.wait [#allocation9], 4096  }
  0x7b   :  { %2782 = vsyncadd [#allocation9], 4294963200 }
  0x7c   :  { %2783 = dma.done.wait [#allocation12], 4096  }
  0x7d   :  { %2784 = vsyncadd [#allocation12], 4294963200  ;;  %v3396_v0 = vmov 0.0|0.0   ;;  %vm2799_vm0 = vmmov 0   ;;  %v2800_v1 = vmov 0.0   ;;  %v123_v2 = vld [vmem:[#allocation7] sm:$0xff] }
  0x7e   :  { %2204 = vmatprep.subr.bf16.mxu0 %v3396_v0  ;;  %2228 = vmatprep.subr.bf16.mxu1 %v3396_v0  ;;  %v124_v3 = vld [vmem:[#allocation7 + $0x8] sm:$0xff]  ;;  %v139_v4 = vld [vmem:[#allocation8] sm:$0xff]  ;;  %v125_v7 = vld [vmem:[#allocation7 + $0x10] sm:$0xff]  ;;  %s2802_s6 = smov [#allocation14]   ;;  %s2803_s29 = smov [#allocation15]  }
  0x7f   :  { %1711 = vmatprep.mubr.msk.f32.mxu0 %vm2799_vm0, %v2800_v1  ;;  %1746 = vmatprep.mubr.msk.f32.mxu1 %vm2799_vm0, %v2800_v1  ;;  %v2954_v5 = vpack.c.bf16 %v124_v3, %v123_v2  ;;  %v140_v6 = vld [vmem:[#allocation8 + $0x8] sm:$0xff]  ;;  %v126_v8 = vld [vmem:[#allocation7 + $0x18] sm:$0xff]  ;;  %v141_v10 = vld [vmem:[#allocation8 + $0x10] sm:$0xff]  ;;  %s1389_s28 = sshll.u32 %s2802_s6, 4  ;;  %s1399_s0 = sshll.u32 %s2803_s29, 4  ;;  %s1390_s28 = int_to_ptr.vmem [resolvable:$true] %s1389_s28  ;;  %s1400_s0 = int_to_ptr.vmem [resolvable:$true] %s1399_s0 }
  0x80   :  { %v2956_v9 = vpack.c.bf16 %v140_v6, %v139_v4  ;;  %v142_v11 = vld [vmem:[#allocation8 + $0x18] sm:$0xff]  ;;  %v2959_v12 = vpack.c.bf16 %v126_v8, %v125_v7  ;;  %v127_v14 = vld [vmem:[#allocation7 + $0x20] sm:$0xff]  ;;  %v128_v15 = vld [vmem:[#allocation7 + $0x28] sm:$0xff]  ;;  %s2733_s18 = scalar_lea.vmem %s1390_s28, 128  ;;  %p2738_p1 = scmp.lt.s32.totalorder %s1390_s28, %s1390_s28 }
  0x81   :  { %2206 = vmatpush3.bf16.msra.mxu0 %v2954_v5  ;;  %v2963_v13 = vpack.c.bf16 %v142_v11, %v141_v10  ;;  %v143_v16 = vld [vmem:[#allocation8 + $0x20] sm:$0xff]  ;;  %v144_v17 = vld [vmem:[#allocation8 + $0x28] sm:$0xff]  ;;  %v2967_v18 = vpack.c.bf16 %v128_v15, %v127_v14  ;;  %v129_v20 = vld [vmem:[#allocation7 + $0x30] sm:$0xff]  ;;  %p2734_p0 = scmp.ne.s32.totalorder %s1390_s28, %s2733_s18  ;;  %p2739_p2 = scmp.lt.s32.totalorder %s2733_s18, %s2733_s18 }
  0x82   :  { %2230 = vmatpush3.bf16.msra.mxu1 %v2956_v9  ;;  %2207 = vmatprep.subr.bf16.mxu0 %v3396_v0  ;;  %v2971_v19 = vpack.c.bf16 %v144_v17, %v143_v16  ;;  %v130_v21 = vld [vmem:[#allocation7 + $0x38] sm:$0xff]  ;;  %v145_v22 = vld [vmem:[#allocation8 + $0x30] sm:$0xff]  ;;  %v131_v26 = vld [vmem:[#allocation7 + $0x40] sm:$0xff] }
  0x83   :  { %2231 = vmatprep.subr.bf16.mxu1 %v3396_v0  ;;  %v146_v23 = vld [vmem:[#allocation8 + $0x38] sm:$0xff]  ;;  %v2975_v24 = vpack.c.bf16 %v130_v21, %v129_v20  ;;  %v132_v27 = vld [vmem:[#allocation7 + $0x48] sm:$0xff]  ;;  %v147_v28 = vld [vmem:[#allocation8 + $0x40] sm:$0xff]  ;;  %p2740_p3 = por %p2739_p2, %p2738_p1 }
  0x84   :  { %v2979_v25 = vpack.c.bf16 %v146_v23, %v145_v22  ;;  %v148_v29 = vld [vmem:[#allocation8 + $0x48] sm:$0xff]  ;;  %v2983_v30 = vpack.c.bf16 %v132_v27, %v131_v26  ;;  %v133_v32 = vld [vmem:[#allocation7 + $0x50] sm:$0xff]  ;;  %v134_v33 = vld [vmem:[#allocation7 + $0x58] sm:$0xff] }
  0x85   :  { %2209 = vmatpush3.bf16.msra.mxu0 %v2959_v12  ;;  %v2987_v31 = vpack.c.bf16 %v148_v29, %v147_v28  ;;  %v149_v34 = vld [vmem:[#allocation8 + $0x50] sm:$0xff]  ;;  %v150_v35 = vld [vmem:[#allocation8 + $0x58] sm:$0xff]  ;;  %v2991_v36 = vpack.c.bf16 %v134_v33, %v133_v32  ;;  %v135_v38 = vld [vmem:[#allocation7 + $0x60] sm:$0xff]  ;;  %p2741_p4 = pnand %p2740_p3, %p2734_p0 }
  0x86   :  { %2233 = vmatpush3.bf16.msra.mxu1 %v2963_v13  ;;  %2210 = vmatprep.subr.bf16.mxu0 %v3396_v0  ;;  %v2995_v37 = vpack.c.bf16 %v150_v35, %v149_v34  ;;  %v136_v39 = vld [vmem:[#allocation7 + $0x68] sm:$0xff]  ;;  %v151_v40 = vld [vmem:[#allocation8 + $0x60] sm:$0xff]  ;;  %v137_v44 = vld [vmem:[#allocation7 + $0x70] sm:$0xff] }
  0x87   :  { %2234 = vmatprep.subr.bf16.mxu1 %v3396_v0  ;;  %v152_v41 = vld [vmem:[#allocation8 + $0x68] sm:$0xff]  ;;  %v2999_v42 = vpack.c.bf16 %v136_v39, %v135_v38  ;;  %v138_v45 = vld [vmem:[#allocation7 + $0x78] sm:$0xff]  ;;  %v153_v46 = vld [vmem:[#allocation8 + $0x70] sm:$0xff]  ;;  %v422_v39 = vlaneseq }
  0x88   :  { %v3003_v43 = vpack.c.bf16 %v152_v41, %v151_v40  ;;  %v154_v47 = vld [vmem:[#allocation8 + $0x78] sm:$0xff]  ;;  %v3007_v48 = vpack.c.bf16 %v138_v45, %v137_v44  ;;  %v155_v50 = vld [vmem:[#allocation10] sm:$0xff]  ;;  %v156_v51 = vld [vmem:[#allocation10 + $0x8] sm:$0xff] }
  0x89   :  { %2212 = vmatpush3.bf16.msra.mxu0 %v2967_v18  ;;  %v3011_v49 = vpack.c.bf16 %v154_v47, %v153_v46  ;;  %v3015_v52 = vld [vmem:[#allocation2] sm:$0xff]  ;;  %v3017_v53 = vpack.c.bf16 %v156_v51, %v155_v50  ;;  %v3021_v54 = vld [vmem:[#allocation5] sm:$0xff]  ;;  %v159_v58 = vld [vmem:[#allocation10 + $0x20] sm:$0xff]  ;;  %v3072_v40 = vand.u32 127, %v422_v39 }
  0x8a   :  { %2236 = vmatpush3.bf16.msra.mxu1 %v2971_v19  ;;  %2213 = vmatprep.subr.bf16.mxu0 %v3396_v0  ;;  %v157_v55 = vld [vmem:[#allocation10 + $0x10] sm:$0xff]  ;;  %v158_v56 = vld [vmem:[#allocation10 + $0x18] sm:$0xff]  ;;  %v160_v59 = vld [vmem:[#allocation10 + $0x28] sm:$0xff]  ;;  %v343_v20 = vadd.f32 %v3021_v54, %v3015_v52 }
  0x8b   :  { %2237 = vmatprep.subr.bf16.mxu1 %v3396_v0  ;;  %v3027_v57 = vpack.c.bf16 %v158_v56, %v157_v55  ;;  %v3035_v60 = vpack.c.bf16 %v160_v59, %v159_v58  ;;  %v161_v61 = vld [vmem:[#allocation10 + $0x30] sm:$0xff]  ;;  %v162_v62 = vld [vmem:[#allocation10 + $0x38] sm:$0xff]  ;;  %v163_v2 = vld [vmem:[#allocation10 + $0x40] sm:$0xff] }
  0x8c   :  { %v3039_v63 = vpack.c.bf16 %v162_v62, %v161_v61  ;;  %v164_v3 = vld [vmem:[#allocation10 + $0x48] sm:$0xff]  ;;  %v165_v6 = vld [vmem:[#allocation10 + $0x50] sm:$0xff]  ;;  %v166_v7 = vld [vmem:[#allocation10 + $0x58] sm:$0xff] }
  0x8d   :  { %2215 = vmatpush3.bf16.msra.mxu0 %v2975_v24  ;;  %v3043_v4 = vpack.c.bf16 %v164_v3, %v163_v2  ;;  %v3047_v8 = vpack.c.bf16 %v166_v7, %v165_v6  ;;  %v167_v10 = vld [vmem:[#allocation10 + $0x60] sm:$0xff]  ;;  %v168_v11 = vld [vmem:[#allocation10 + $0x68] sm:$0xff]  ;;  %v169_v15 = vld [vmem:[#allocation10 + $0x70] sm:$0xff] }
  0x8e   :  { %2239 = vmatpush3.bf16.msra.mxu1 %v2979_v25  ;;  %2216 = vmatprep.subr.bf16.mxu0 %v3396_v0  ;;  %v3051_v14 = vpack.c.bf16 %v168_v11, %v167_v10  ;;  %v170_v16 = vld [vmem:[#allocation10 + $0x78] sm:$0xff]  ;;  %v171_v47 = vld [vmem:[#allocation11] sm:$0xff]  ;;  %v172_v50 = vld [vmem:[#allocation11 + $0x8] sm:$0xff] }
  0x8f   :  { %2240 = vmatprep.subr.bf16.mxu1 %v3396_v0  ;;  %v3055_v17 = vpack.c.bf16 %v170_v16, %v169_v15  ;;  %v187_v51 = vld [vmem:[#allocation13] sm:$0xff]  ;;  %v3081_v55 = vpack.c.bf16 %v172_v50, %v171_v47  ;;  %v188_v56 = vld [vmem:[#allocation13 + $0x8] sm:$0xff]  ;;  %v173_v58 = vld [vmem:[#allocation11 + $0x10] sm:$0xff] }
  0x90   :  { %v174_v59 = vld [vmem:[#allocation11 + $0x18] sm:$0xff]  ;;  %v3083_v61 = vpack.c.bf16 %v188_v56, %v187_v51  ;;  %v189_v62 = vld [vmem:[#allocation13 + $0x10] sm:$0xff]  ;;  %v175_v7 = vld [vmem:[#allocation11 + $0x20] sm:$0xff] }
  0x91   :  { %2218 = vmatpush3.bf16.msra.mxu0 %v2983_v30  ;;  %v190_v2 = vld [vmem:[#allocation13 + $0x18] sm:$0xff]  ;;  %v3086_v3 = vpack.c.bf16 %v174_v59, %v173_v58  ;;  %v176_v10 = vld [vmem:[#allocation11 + $0x28] sm:$0xff]  ;;  %v191_v11 = vld [vmem:[#allocation13 + $0x20] sm:$0xff] }
  0x92   :  { %2242 = vmatpush3.bf16.msra.mxu1 %v2987_v31  ;;  %2219 = vmatprep.subr.bf16.mxu0 %v3396_v0  ;;  %v3090_v6 = vpack.c.bf16 %v190_v2, %v189_v62  ;;  %v192_v15 = vld [vmem:[#allocation13 + $0x28] sm:$0xff]  ;;  %v3094_v16 = vpack.c.bf16 %v176_v10, %v175_v7  ;;  %v182_v47 = vld [vmem:[#allocation11 + $0x58] sm:$0xff]  ;;  %v197_v50 = vld [vmem:[#allocation13 + $0x50] sm:$0xff] }
  0x93   :  { %2243 = vmatprep.subr.bf16.mxu1 %v3396_v0  ;;  %v198_v51 = vld [vmem:[#allocation13 + $0x58] sm:$0xff]  ;;  %v183_v59 = vld [vmem:[#allocation11 + $0x60] sm:$0xff]  ;;  %v184_v62 = vld [vmem:[#allocation11 + $0x68] sm:$0xff] }
  0x94   :  { %v3122_v58 = vpack.c.bf16 %v198_v51, %v197_v50  ;;  %v199_v2 = vld [vmem:[#allocation13 + $0x60] sm:$0xff]  ;;  %v200_v7 = vld [vmem:[#allocation13 + $0x68] sm:$0xff]  ;;  %v3126_v10 = vpack.c.bf16 %v184_v62, %v183_v59  ;;  %v2801_v59 = vmov 1.0  }
  0x95   :  { %2221 = vmatpush3.bf16.msra.mxu0 %v2991_v36 }
  0x96   :  { %2245 = vmatpush3.bf16.msra.mxu1 %v2995_v37  ;;  %2222 = vmatprep.subr.bf16.mxu0 %v3396_v0 }
  0x97   :  { %2246 = vmatprep.subr.bf16.mxu1 %v3396_v0 }
  0x99   :  { %2224 = vmatpush3.bf16.msra.mxu0 %v2999_v42 }
  0x9a   :  { %2248 = vmatpush3.bf16.msra.mxu1 %v3003_v43  ;;  %2225 = vmatprep.subr.bf16.mxu0 %v3396_v0 }
  0x9b   :  { %2249 = vmatprep.subr.bf16.mxu1 %v3396_v0 }
  0x9d   :  { %2227 = vmatpush3.bf16.msra.mxu0 %v3007_v48 }
  0x9e   :  { %2251 = vmatpush3.bf16.msra.mxu1 %v3011_v49  ;;  %2252 = vmatprep.subr.bf16.mxu0 %v3396_v0 }
  0x9f   :  { %2276 = vmatprep.subr.bf16.mxu1 %v3396_v0 }
  0xa0   :  { %1712 = vmatmul.mubr.f32.vlgmr.msra.gmra.mrb[0].mxu0 %v3015_v52 }
  0xa1   :  { %1747 = vmatmul.mubr.f32.vlgmr.msra.gmra.mrb[0].mxu1 %v3021_v54  ;;  %2254 = vmatpush3.bf16.msra.mxu0 %v3017_v53 }
  0xa2   :  { %2255 = vmatprep.subr.bf16.mxu0 %v3396_v0  ;;  %1781 = vmatprep.mubr.msk.f32.mxu0 %vm2799_vm0, %v2800_v1 }
  0xa3   :  { %1816 = vmatprep.mubr.msk.f32.mxu1 %vm2799_vm0, %v2800_v1  ;;  %2278 = vmatpush3.bf16.msra.mxu1 %v3081_v55 }
  0xa4   :  { %2279 = vmatprep.subr.bf16.mxu1 %v3396_v0 }
  0xa5   :  { %2257 = vmatpush3.bf16.msra.mxu0 %v3027_v57 }
  0xa6   :  { %2258 = vmatprep.subr.bf16.mxu0 %v3396_v0 }
  0xa7   :  { %2281 = vmatpush3.bf16.msra.mxu1 %v3086_v3 }
  0xa8   :  { %2282 = vmatprep.subr.bf16.mxu1 %v3396_v0 }
  0xa9   :  { %2260 = vmatpush3.bf16.msra.mxu0 %v3035_v60 }
  0xaa   :  { %2261 = vmatprep.subr.bf16.mxu0 %v3396_v0 }
  0xab   :  { %2284 = vmatpush3.bf16.msra.mxu1 %v3094_v16 }
  0xac   :  { %2285 = vmatprep.subr.bf16.mxu1 %v3396_v0 }
  0xad   :  { %2263 = vmatpush3.bf16.msra.mxu0 %v3039_v63 }
  0xae   :  { %2264 = vmatprep.subr.bf16.mxu0 %v3396_v0 }
  0xb1   :  { %2266 = vmatpush3.bf16.msra.mxu0 %v3043_v4 }
  0xb2   :  { %2267 = vmatprep.subr.bf16.mxu0 %v3396_v0 }
  0xb5   :  { %2269 = vmatpush3.bf16.msra.mxu0 %v3047_v8 }
  0xb6   :  { %2270 = vmatprep.subr.bf16.mxu0 %v3396_v0 }
  0xb9   :  { %2272 = vmatpush3.bf16.msra.mxu0 %v3051_v14 }
  0xba   :  { %2273 = vmatprep.subr.bf16.mxu0 %v3396_v0 }
  0xbd   :  { %2275 = vmatpush3.bf16.msra.mxu0 %v3055_v17 }
  0xbe   :  { %2300 = vmatprep.subr.bf16.mxu0 %v3396_v0 }
  0xc0   :  { %1782 = vmatmul.mubr.f32.vlgmr.msra.gmra.mrb[2].mxu0 %v343_v20  ;;  %v3098_v20 = vpack.c.bf16 %v192_v15, %v191_v11  ;;  %v3130_v11 = vpack.c.bf16 %v200_v7, %v199_v2 }
  0xc1   :  { %1851 = vmatprep.mubr.msk.f32.mxu0 %vm2799_vm0, %v2800_v1  ;;  %2302 = vmatpush3.bf16.msra.mxu0 %v3083_v61 }
  0xc2   :  { %2303 = vmatprep.subr.bf16.mxu0 %v3396_v0 }
  0xc5   :  { %2305 = vmatpush3.bf16.msra.mxu0 %v3090_v6 }
  0xc6   :  { %2306 = vmatprep.subr.bf16.mxu0 %v3396_v0 }
  0xc9   :  { %2308 = vmatpush3.bf16.msra.mxu0 %v3098_v20 }
  0xca   :  { %2309 = vmatprep.subr.bf16.mxu0 %v3396_v0 }
 0x173   :  { %v269_v21 = vpop.f32.mrb[0].mxu0 }
 0x174   :  { %v1713_v22 = vpop.f32.mrb[1].mxu0  ;;  %v339_v23 = vpop.f32.mrb[0].mxu1 }
 0x175   :  { %v3064_v26 = vadd.f32 %v339_v23, %v269_v21  ;;  %v1748_v27 = vpop.f32.mrb[1].mxu1  ;;  %v178_v22 = vld [vmem:[#allocation11 + $0x38] sm:$0xff] }
 0x176   :  { %v194_v27 = vld [vmem:[#allocation13 + $0x38] sm:$0xff] }
 0x177   :  { %v417_v34 = vmul.f32 %v3064_v26, %v3064_v26 }
 0x193   :  { %v410_v28 = vpop.f32.mrb[2].mxu0 }
 0x194   :  { %v415_v29 = vsub.f32 %v410_v28, %v269_v21  ;;  %v1783_v32 = vpop.f32.mrb[3].mxu0  ;;  %v177_v21 = vld [vmem:[#allocation11 + $0x30] sm:$0xff] }
 0x195   :  { %v3102_v28 = vpack.c.bf16 %v178_v22, %v177_v21  ;;  %v179_v32 = vld [vmem:[#allocation11 + $0x40] sm:$0xff] }
 0x196   :  { %v3066_v33 = vadd.f32 %v415_v29, %v339_v23  ;;  %v193_v23 = vld [vmem:[#allocation13 + $0x30] sm:$0xff] }
 0x197   :  { %v3106_v29 = vpack.c.bf16 %v194_v27, %v193_v23  ;;  %2287 = vmatpush3.bf16.msra.mxu1 %v3102_v28  ;;  %v185_v27 = vld [vmem:[#allocation11 + $0x70] sm:$0xff] }
 0x198   :  { %v418_v35 = vmul.f32 %v3066_v33, %v3066_v33  ;;  %2288 = vmatprep.subr.bf16.mxu1 %v3396_v0 }
 0x199   :  { %2311 = vmatpush3.bf16.msra.mxu0 %v3106_v29 }
 0x19a   :  { %v419_v38 = vadd.f32 %v418_v35, %v417_v34  ;;  %v180_v34 = vld [vmem:[#allocation11 + $0x48] sm:$0xff]  ;;  %v195_v35 = vld [vmem:[#allocation13 + $0x40] sm:$0xff]  ;;  %2312 = vmatprep.subr.bf16.mxu0 %v3396_v0 }
 0x19b   :  { %v3110_v39 = vpack.c.bf16 %v180_v34, %v179_v32  ;;  %v186_v32 = vld [vmem:[#allocation11 + $0x78] sm:$0xff]  ;;  %v201_v34 = vld [vmem:[#allocation13 + $0x70] sm:$0xff] }
 0x19c   :  { %420 = vmax.xlane.f32.xlu0 %v419_v38 }
 0x19d   :  { %2290 = vmatpush3.bf16.msra.mxu1 %v3110_v39 }
 0x19e   :  { %2291 = vmatprep.subr.bf16.mxu1 %v3396_v0 }
 0x229   :  { %v421_v41 = vpop.xlane.xlu0 %420 }
 0x22a   :  { %vm424_vm1 = vcmp.eq.f32.partialorder %v419_v38, %v421_v41  ;;  %v196_v38 = vld [vmem:[#allocation13 + $0x48] sm:$0xff] }
 0x22b   :  { %v3075_v44 = vsel %vm424_vm1, %v3072_v40, 128  ;;  %v3114_v41 = vpack.c.bf16 %v196_v38, %v195_v35  ;;  %v3139_v35 = vpack.c.bf16 %v186_v32, %v185_v27  ;;  %v202_v38 = vld [vmem:[#allocation13 + $0x78] sm:$0xff] }
 0x22c   :  { %v427_v45 = vshra.s32 %v3075_v44, 16  ;;  %v426_v15 = vand.u32 65535, %v3075_v44 }
 0x22d   :  { %2314 = vmatpush3.bf16.msra.mxu0 %v3114_v41 }
 0x22e   :  { %v3078_v46 = vcvt.s32.f32 %v427_v45  ;;  %v181_v45 = vld [vmem:[#allocation11 + $0x50] sm:$0xff]  ;;  %2315 = vmatprep.subr.bf16.mxu0 %v3396_v0  ;;  %v428_v22 = vcvt.s32.f32 %v426_v15 }
 0x22f   :  { %v3118_v56 = vpack.c.bf16 %v182_v47, %v181_v45  ;;  %v3141_v45 = vpack.c.bf16 %v202_v38, %v201_v34 }
 0x230   :  { %430 = vmin.xlane.f32.xlu0 %v3078_v46 }
 0x231   :  { %2293 = vmatpush3.bf16.msra.mxu1 %v3118_v56  ;;  %2317 = vmatpush3.bf16.msra.mxu0 %v3122_v58 }
 0x232   :  { %2294 = vmatprep.subr.bf16.mxu1 %v3396_v0  ;;  %2318 = vmatprep.subr.bf16.mxu0 %v3396_v0 }
 0x235   :  { %2296 = vmatpush3.bf16.msra.mxu1 %v3126_v10  ;;  %2320 = vmatpush3.bf16.msra.mxu0 %v3130_v11 }
 0x236   :  { %2297 = vmatprep.subr.bf16.mxu1 %v3396_v0  ;;  %2321 = vmatprep.subr.bf16.mxu0 %v3396_v0 }
 0x239   :  { %2299 = vmatpush3.bf16.msra.mxu1 %v3139_v35  ;;  %2323 = vmatpush3.bf16.msra.mxu0 %v3141_v45 }
 0x23a   :  { %2324 = vmatprep.subr.bf16.mxu1 %v3396_v0  ;;  %2348 = vmatprep.subr.bf16.mxu0 %v3396_v0 }
 0x2bd   :  { %v431_v21 = vpop.xlane.xlu0 %430 }
 0x2be   :  { %vm432_vm2 = vcmp.eq.f32.partialorder %v3078_v46, %v431_v21  ;;  %v437_v44 = vcvt.f32.s32 %v431_v21 }
 0x2bf   :  { %v433_v23 = vsel %vm432_vm2, %v428_v22, inf }
 0x2c0   :  { %434 = vmin.xlane.f32.xlu1 %v433_v23  ;;  %v438_v47 = vshll.u32 %v437_v44, 16 }
 0x34d   :  { %v435_v46 = vpop.xlane.xlu1 %434 }
 0x34e   :  { %v436_v50 = vcvt.f32.s32 %v435_v46 }
 0x350   :  { %v439_v51 = vadd.s32 %v438_v47, %v436_v50 }
 0x352   :  { %vm440_vm3 = vcmp.eq.s32.totalorder %v3072_v40, %v439_v51 }
 0x353   :  { %1817 = vmatmul.mubr.msk.f32.vlgmr.msra.gmra.mrb[2].mxu1 %vm440_vm3, %v2801_v59  ;;  %1852 = vmatmul.mubr.msk.f32.vlgmr.msra.gmra.mrb[4].mxu0 %vm440_vm3, %v2801_v59  ;;  %v1415_v62 = vsel %vm440_vm3, 1.0, %v2800_v1 }
 0x354   :  { %v446_v2 = vmul.f32 %v1415_v62, %v3066_v33  ;;  %v443_v7 = vmul.f32 %v1415_v62, %v3064_v26  ;;  %2326 = vmatpush3.bf16.msra.mxu1 %v2954_v5  ;;  %2350 = vmatpush3.bf16.msra.mxu0 %v2956_v9 }
 0x355   :  { %2327 = vmatprep.subr.bf16.mxu1 %v3396_v0  ;;  %2351 = vmatprep.subr.bf16.mxu0 %v3396_v0 }
 0x356   :  { %447 = vadd.xlane.f32.xlu0 %v446_v2  ;;  %444 = vadd.xlane.f32.xlu1 %v443_v7 }
 0x357   :  { %1886 = vmatprep.mubr.msk.f32.mxu1 %vm2799_vm0, %v2800_v1  ;;  %1921 = vmatprep.mubr.msk.f32.mxu0 %vm2799_vm0, %v2800_v1 }
 0x358   :  { %2329 = vmatpush3.bf16.msra.mxu1 %v2959_v12  ;;  %2353 = vmatpush3.bf16.msra.mxu0 %v2963_v13 }
 0x359   :  { %2330 = vmatprep.subr.bf16.mxu1 %v3396_v0  ;;  %2354 = vmatprep.subr.bf16.mxu0 %v3396_v0 }
 0x35c   :  { %2332 = vmatpush3.bf16.msra.mxu1 %v2967_v18  ;;  %2356 = vmatpush3.bf16.msra.mxu0 %v2971_v19 }
 0x35d   :  { %2333 = vmatprep.subr.bf16.mxu1 %v3396_v0  ;;  %2357 = vmatprep.subr.bf16.mxu0 %v3396_v0 }
 0x360   :  { %2335 = vmatpush3.bf16.msra.mxu1 %v2975_v24  ;;  %2359 = vmatpush3.bf16.msra.mxu0 %v2979_v25 }
 0x361   :  { %2336 = vmatprep.subr.bf16.mxu1 %v3396_v0  ;;  %2360 = vmatprep.subr.bf16.mxu0 %v3396_v0 }
 0x364   :  { %2338 = vmatpush3.bf16.msra.mxu1 %v2983_v30  ;;  %2362 = vmatpush3.bf16.msra.mxu0 %v2987_v31 }
 0x365   :  { %2339 = vmatprep.subr.bf16.mxu1 %v3396_v0  ;;  %2363 = vmatprep.subr.bf16.mxu0 %v3396_v0 }
 0x368   :  { %2341 = vmatpush3.bf16.msra.mxu1 %v2991_v36  ;;  %2365 = vmatpush3.bf16.msra.mxu0 %v2995_v37 }
 0x369   :  { %2342 = vmatprep.subr.bf16.mxu1 %v3396_v0  ;;  %2366 = vmatprep.subr.bf16.mxu0 %v3396_v0 }
 0x36c   :  { %2344 = vmatpush3.bf16.msra.mxu1 %v2999_v42  ;;  %2368 = vmatpush3.bf16.msra.mxu0 %v3003_v43 }
 0x36d   :  { %2345 = vmatprep.subr.bf16.mxu1 %v3396_v0  ;;  %2369 = vmatprep.subr.bf16.mxu0 %v3396_v0 }
 0x370   :  { %2347 = vmatpush3.bf16.msra.mxu1 %v3007_v48  ;;  %2371 = vmatpush3.bf16.msra.mxu0 %v3011_v49 }
 0x371   :  { %2372 = vmatprep.subr.bf16.mxu1 %v3396_v0  ;;  %2396 = vmatprep.subr.bf16.mxu0 %v3396_v0 }
 0x3e3   :  { %v448_v26 = vpop.xlane.xlu0 %447  ;;  %v445_v33 = vpop.xlane.xlu1 %444 }
 0x426   :  { %v515_v15 = vpop.f32.mrb[2].mxu1  ;;  %v585_v21 = vpop.f32.mrb[4].mxu0 }
 0x427   :  { %v589_v22 = vmul.f32 %v515_v15, %v445_v33  ;;  %v593_v23 = vmul.f32 %v515_v15, %v448_v26  ;;  %v590_v27 = vmul.f32 %v585_v21, %v448_v26  ;;  %v592_v32 = vmul.f32 %v585_v21, %v445_v33  ;;  %v1818_v34 = vpop.f32.mrb[3].mxu1  ;;  %v1853_v38 = vpop.f32.mrb[5].mxu0 }
 0x429   :  { %v591_v44 = vsub.f32 %v589_v22, %v590_v27  ;;  %v594_v46 = vadd.f32 %v593_v23, %v592_v32 }
 0x42b   :  { %v3190_v47 = vsub.f32 %v3015_v52, %v591_v44  ;;  %v3193_v50 = vsub.f32 %v3021_v54, %v594_v46 }
 0x42d   :  { %1887 = vmatmul.mubr.f32.vlgmr.msra.gmra.mrb[4].mxu1 %v3190_v47  ;;  %1922 = vmatmul.mubr.f32.vlgmr.msra.gmra.mrb[6].mxu0 %v3193_v50  ;;  %v737_v52 = vadd.f32 %v3193_v50, %v3190_v47 }
 0x42e   :  { %2374 = vmatpush3.bf16.msra.mxu1 %v3017_v53  ;;  %1956 = vmatprep.mubr.msk.f32.mxu1 %vm2799_vm0, %v2800_v1 }
 0x42f   :  { %2375 = vmatprep.subr.bf16.mxu1 %v3396_v0  ;;  %2398 = vmatpush3.bf16.msra.mxu0 %v3081_v55 }
 0x430   :  { %2399 = vmatprep.subr.bf16.mxu0 %v3396_v0  ;;  %1991 = vmatprep.mubr.msk.f32.mxu0 %vm2799_vm0, %v2800_v1 }
 0x432   :  { %2377 = vmatpush3.bf16.msra.mxu1 %v3027_v57 }
 0x433   :  { %2378 = vmatprep.subr.bf16.mxu1 %v3396_v0  ;;  %2401 = vmatpush3.bf16.msra.mxu0 %v3086_v3 }
 0x434   :  { %2402 = vmatprep.subr.bf16.mxu0 %v3396_v0 }
 0x436   :  { %2380 = vmatpush3.bf16.msra.mxu1 %v3035_v60 }
 0x437   :  { %2381 = vmatprep.subr.bf16.mxu1 %v3396_v0  ;;  %2404 = vmatpush3.bf16.msra.mxu0 %v3094_v16 }
 0x438   :  { %2405 = vmatprep.subr.bf16.mxu0 %v3396_v0 }
 0x43a   :  { %2383 = vmatpush3.bf16.msra.mxu1 %v3039_v63 }
 0x43b   :  { %2384 = vmatprep.subr.bf16.mxu1 %v3396_v0  ;;  %2407 = vmatpush3.bf16.msra.mxu0 %v3102_v28 }
 0x43c   :  { %2408 = vmatprep.subr.bf16.mxu0 %v3396_v0 }
 0x43e   :  { %2386 = vmatpush3.bf16.msra.mxu1 %v3043_v4 }
 0x43f   :  { %2387 = vmatprep.subr.bf16.mxu1 %v3396_v0  ;;  %2410 = vmatpush3.bf16.msra.mxu0 %v3110_v39 }
 0x440   :  { %2411 = vmatprep.subr.bf16.mxu0 %v3396_v0 }
 0x442   :  { %2389 = vmatpush3.bf16.msra.mxu1 %v3047_v8 }
 0x443   :  { %2390 = vmatprep.subr.bf16.mxu1 %v3396_v0  ;;  %2413 = vmatpush3.bf16.msra.mxu0 %v3118_v56 }
 0x444   :  { %2414 = vmatprep.subr.bf16.mxu0 %v3396_v0 }
 0x446   :  { %2392 = vmatpush3.bf16.msra.mxu1 %v3051_v14 }
 0x447   :  { %2393 = vmatprep.subr.bf16.mxu1 %v3396_v0  ;;  %2416 = vmatpush3.bf16.msra.mxu0 %v3126_v10 }
 0x448   :  { %2417 = vmatprep.subr.bf16.mxu0 %v3396_v0 }
 0x44a   :  { %2395 = vmatpush3.bf16.msra.mxu1 %v3055_v17 }
 0x44b   :  { %2420 = vmatprep.subr.bf16.mxu1 %v3396_v0  ;;  %2419 = vmatpush3.bf16.msra.mxu0 %v3139_v35 }
 0x44c   :  { %2444 = vmatprep.subr.bf16.mxu0 %v3396_v0 }
 0x44d   :  { %1957 = vmatmul.mubr.f32.vlgmr.msra.gmra.mrb[6].mxu1 %v737_v52 }
 0x44e   :  { %2422 = vmatpush3.bf16.msra.mxu1 %v3083_v61  ;;  %2026 = vmatprep.mubr.msk.f32.mxu1 %vm2799_vm0, %v2800_v1 }
 0x44f   :  { %2423 = vmatprep.subr.bf16.mxu1 %v3396_v0 }
 0x452   :  { %2425 = vmatpush3.bf16.msra.mxu1 %v3090_v6 }
 0x453   :  { %2426 = vmatprep.subr.bf16.mxu1 %v3396_v0 }
 0x456   :  { %2428 = vmatpush3.bf16.msra.mxu1 %v3098_v20 }
 0x457   :  { %2429 = vmatprep.subr.bf16.mxu1 %v3396_v0 }
 0x45a   :  { %2431 = vmatpush3.bf16.msra.mxu1 %v3106_v29 }
 0x45b   :  { %2432 = vmatprep.subr.bf16.mxu1 %v3396_v0 }
 0x45e   :  { %2434 = vmatpush3.bf16.msra.mxu1 %v3114_v41 }
 0x45f   :  { %2435 = vmatprep.subr.bf16.mxu1 %v3396_v0 }
 0x462   :  { %2437 = vmatpush3.bf16.msra.mxu1 %v3122_v58 }
 0x463   :  { %2438 = vmatprep.subr.bf16.mxu1 %v3396_v0 }
 0x466   :  { %2440 = vmatpush3.bf16.msra.mxu1 %v3130_v11 }
 0x467   :  { %2441 = vmatprep.subr.bf16.mxu1 %v3396_v0 }
 0x46a   :  { %2443 = vmatpush3.bf16.msra.mxu1 %v3141_v45 }
 0x46b   :  { %2468 = vmatprep.subr.bf16.mxu1 %v3396_v0 }
 0x500   :  { %v663_v54 = vpop.f32.mrb[4].mxu1  ;;  %v733_v51 = vpop.f32.mrb[6].mxu0 }
 0x501   :  { %v808_v62 = vadd.f32 %v733_v51, %v663_v54  ;;  %v1888_v2 = vpop.f32.mrb[5].mxu1  ;;  %v1923_v7 = vpop.f32.mrb[7].mxu0 }
 0x503   :  { %v811_v22 = vmul.f32 %v808_v62, %v808_v62 }
 0x520   :  { %v804_v26 = vpop.f32.mrb[6].mxu1 }
 0x521   :  { %v809_v33 = vsub.f32 %v804_v26, %v663_v54  ;;  %v1958_v15 = vpop.f32.mrb[7].mxu1 }
 0x523   :  { %v810_v21 = vadd.f32 %v809_v33, %v733_v51 }
 0x525   :  { %v812_v23 = vmul.f32 %v810_v21, %v810_v21 }
 0x527   :  { %v813_v27 = vadd.f32 %v812_v23, %v811_v22 }
 0x529   :  { %814 = vmax.xlane.f32.xlu1 %v813_v27 }
 0x5b6   :  { %v815_v32 = vpop.xlane.xlu1 %814 }
 0x5b7   :  { %vm816_vm4 = vcmp.eq.f32.partialorder %v813_v27, %v815_v32 }
 0x5b8   :  { %v817_v34 = vsel %vm816_vm4, %v3072_v40, 128 }
 0x5b9   :  { %v819_v38 = vshra.s32 %v817_v34, 16  ;;  %v818_v46 = vand.u32 65535, %v817_v34 }
 0x5bb   :  { %v821_v44 = vcvt.s32.f32 %v819_v38  ;;  %v820_v0 = vcvt.s32.f32 %v818_v46 }
 0x5bd   :  { %822 = vmin.xlane.f32.xlu0 %v821_v44 }
 0x64a   :  { %v823_v52 = vpop.xlane.xlu0 %822 }
 0x64b   :  { %vm824_vm5 = vcmp.eq.f32.partialorder %v821_v44, %v823_v52  ;;  %v829_v54 = vcvt.f32.s32 %v823_v52 }
 0x64c   :  { %v825_v2 = vsel %vm824_vm5, %v820_v0, inf  ;;  %v3398_v0 = vmov 0.0|0.0  }
 0x64d   :  { %826 = vmin.xlane.f32.xlu1 %v825_v2  ;;  %v830_v51 = vshll.u32 %v829_v54, 16 }
 0x6da   :  { %v827_v7 = vpop.xlane.xlu1 %826 }
 0x6db   :  { %v828_v26 = vcvt.f32.s32 %v827_v7 }
 0x6dd   :  { %v831_v33 = vadd.s32 %v830_v51, %v828_v26 }
 0x6df   :  { %vm832_vm6 = vcmp.eq.s32.totalorder %v3072_v40, %v831_v33 }
 0x6e0   :  { %1992 = vmatmul.mubr.msk.f32.vlgmr.msra.gmra.mrb[8].mxu0 %vm832_vm6, %v2801_v59  ;;  %2027 = vmatmul.mubr.msk.f32.vlgmr.msra.gmra.mrb[8].mxu1 %vm832_vm6, %v2801_v59  ;;  %v1418_v15 = vsel %vm832_vm6, 1.0, %v2800_v1 }
 0x6e1   :  { %v838_v22 = vmul.f32 %v1418_v15, %v810_v21  ;;  %v835_v23 = vmul.f32 %v1418_v15, %v808_v62  ;;  %2446 = vmatpush3.bf16.msra.mxu0 %v2954_v5  ;;  %2470 = vmatpush3.bf16.msra.mxu1 %v2956_v9 }
 0x6e2   :  { %2447 = vmatprep.subr.bf16.mxu0 %v3398_v0  ;;  %2471 = vmatprep.subr.bf16.mxu1 %v3398_v0 }
 0x6e3   :  { %839 = vadd.xlane.f32.xlu1 %v838_v22  ;;  %836 = vadd.xlane.f32.xlu0 %v835_v23 }
 0x6e4   :  { %2061 = vmatprep.mubr.msk.f32.mxu0 %vm2799_vm0, %v2800_v1  ;;  %2096 = vmatprep.mubr.msk.f32.mxu1 %vm2799_vm0, %v2800_v1 }
 0x6e5   :  { %2449 = vmatpush3.bf16.msra.mxu0 %v2959_v12  ;;  %2473 = vmatpush3.bf16.msra.mxu1 %v2963_v13 }
 0x6e6   :  { %2450 = vmatprep.subr.bf16.mxu0 %v3398_v0  ;;  %2474 = vmatprep.subr.bf16.mxu1 %v3398_v0 }
 0x6e9   :  { %2452 = vmatpush3.bf16.msra.mxu0 %v2967_v18  ;;  %2476 = vmatpush3.bf16.msra.mxu1 %v2971_v19 }
 0x6ea   :  { %2453 = vmatprep.subr.bf16.mxu0 %v3398_v0  ;;  %2477 = vmatprep.subr.bf16.mxu1 %v3398_v0 }
 0x6ed   :  { %2455 = vmatpush3.bf16.msra.mxu0 %v2975_v24  ;;  %2479 = vmatpush3.bf16.msra.mxu1 %v2979_v25 }
 0x6ee   :  { %2456 = vmatprep.subr.bf16.mxu0 %v3398_v0  ;;  %2480 = vmatprep.subr.bf16.mxu1 %v3398_v0 }
 0x6f1   :  { %2458 = vmatpush3.bf16.msra.mxu0 %v2983_v30  ;;  %2482 = vmatpush3.bf16.msra.mxu1 %v2987_v31 }
 0x6f2   :  { %2459 = vmatprep.subr.bf16.mxu0 %v3398_v0  ;;  %2483 = vmatprep.subr.bf16.mxu1 %v3398_v0 }
 0x6f5   :  { %2461 = vmatpush3.bf16.msra.mxu0 %v2991_v36  ;;  %2485 = vmatpush3.bf16.msra.mxu1 %v2995_v37 }
 0x6f6   :  { %2462 = vmatprep.subr.bf16.mxu0 %v3398_v0  ;;  %2486 = vmatprep.subr.bf16.mxu1 %v3398_v0 }
 0x6f9   :  { %2464 = vmatpush3.bf16.msra.mxu0 %v2999_v42  ;;  %2488 = vmatpush3.bf16.msra.mxu1 %v3003_v43 }
 0x6fa   :  { %2465 = vmatprep.subr.bf16.mxu0 %v3398_v0  ;;  %2489 = vmatprep.subr.bf16.mxu1 %v3398_v0 }
 0x6fd   :  { %2467 = vmatpush3.bf16.msra.mxu0 %v3007_v48  ;;  %2491 = vmatpush3.bf16.msra.mxu1 %v3011_v49 }
 0x6fe   :  { %2492 = vmatprep.subr.bf16.mxu0 %v3398_v0  ;;  %2516 = vmatprep.subr.bf16.mxu1 %v3398_v0 }
 0x770   :  { %v840_v5 = vpop.xlane.xlu1 %839  ;;  %v837_v9 = vpop.xlane.xlu0 %836 }
 0x7b3   :  { %v907_v12 = vpop.f32.mrb[8].mxu0  ;;  %v977_v13 = vpop.f32.mrb[8].mxu1 }
 0x7b4   :  { %v981_v18 = vmul.f32 %v907_v12, %v837_v9  ;;  %v985_v19 = vmul.f32 %v907_v12, %v840_v5  ;;  %v982_v24 = vmul.f32 %v977_v13, %v840_v5  ;;  %v984_v25 = vmul.f32 %v977_v13, %v837_v9  ;;  %v1993_v30 = vpop.f32.mrb[9].mxu0  ;;  %v2028_v31 = vpop.f32.mrb[9].mxu1 }
 0x7b6   :  { %v983_v36 = vsub.f32 %v981_v18, %v982_v24  ;;  %v986_v37 = vadd.f32 %v985_v19, %v984_v25 }
 0x7b8   :  { %v3295_v42 = vsub.f32 %v3190_v47, %v983_v36  ;;  %v3298_v43 = vsub.f32 %v3193_v50, %v986_v37 }
 0x7ba   :  { %2062 = vmatmul.mubr.f32.vlgmr.msra.gmra.mrb[10].mxu0 %v3295_v42  ;;  %2097 = vmatmul.mubr.f32.vlgmr.msra.gmra.mrb[10].mxu1 %v3298_v43  ;;  %v1129_v48 = vadd.f32 %v3298_v43, %v3295_v42 }
 0x7bb   :  { %2494 = vmatpush3.bf16.msra.mxu0 %v3017_v53  ;;  %2131 = vmatprep.mubr.msk.f32.mxu0 %vm2799_vm0, %v2800_v1 }
 0x7bc   :  { %2495 = vmatprep.subr.bf16.mxu0 %v3398_v0  ;;  %2518 = vmatpush3.bf16.msra.mxu1 %v3081_v55 }
 0x7bd   :  { %2519 = vmatprep.subr.bf16.mxu1 %v3398_v0  ;;  %2166 = vmatprep.mubr.msk.f32.mxu1 %vm2799_vm0, %v2800_v1 }
 0x7bf   :  { %2497 = vmatpush3.bf16.msra.mxu0 %v3027_v57 }
 0x7c0   :  { %2498 = vmatprep.subr.bf16.mxu0 %v3398_v0  ;;  %2521 = vmatpush3.bf16.msra.mxu1 %v3086_v3 }
 0x7c1   :  { %2522 = vmatprep.subr.bf16.mxu1 %v3398_v0 }
 0x7c3   :  { %2500 = vmatpush3.bf16.msra.mxu0 %v3035_v60 }
 0x7c4   :  { %2501 = vmatprep.subr.bf16.mxu0 %v3398_v0  ;;  %2524 = vmatpush3.bf16.msra.mxu1 %v3094_v16 }
 0x7c5   :  { %2525 = vmatprep.subr.bf16.mxu1 %v3398_v0 }
 0x7c7   :  { %2503 = vmatpush3.bf16.msra.mxu0 %v3039_v63 }
 0x7c8   :  { %2504 = vmatprep.subr.bf16.mxu0 %v3398_v0  ;;  %2527 = vmatpush3.bf16.msra.mxu1 %v3102_v28 }
 0x7c9   :  { %2528 = vmatprep.subr.bf16.mxu1 %v3398_v0 }
 0x7cb   :  { %2506 = vmatpush3.bf16.msra.mxu0 %v3043_v4 }
 0x7cc   :  { %2507 = vmatprep.subr.bf16.mxu0 %v3398_v0  ;;  %2530 = vmatpush3.bf16.msra.mxu1 %v3110_v39 }
 0x7cd   :  { %2531 = vmatprep.subr.bf16.mxu1 %v3398_v0 }
 0x7cf   :  { %2509 = vmatpush3.bf16.msra.mxu0 %v3047_v8 }
 0x7d0   :  { %2510 = vmatprep.subr.bf16.mxu0 %v3398_v0  ;;  %2533 = vmatpush3.bf16.msra.mxu1 %v3118_v56 }
 0x7d1   :  { %2534 = vmatprep.subr.bf16.mxu1 %v3398_v0 }
 0x7d3   :  { %2512 = vmatpush3.bf16.msra.mxu0 %v3051_v14 }
 0x7d4   :  { %2513 = vmatprep.subr.bf16.mxu0 %v3398_v0  ;;  %2536 = vmatpush3.bf16.msra.mxu1 %v3126_v10 }
 0x7d5   :  { %2537 = vmatprep.subr.bf16.mxu1 %v3398_v0 }
 0x7d7   :  { %2515 = vmatpush3.bf16.msra.mxu0 %v3055_v17 }
 0x7d8   :  { %2540 = vmatprep.subr.bf16.mxu0 %v3398_v0  ;;  %2539 = vmatpush3.bf16.msra.mxu1 %v3139_v35 }
 0x7da   :  { %2132 = vmatmul.mubr.f32.vlgmr.msra.gmra.mrb[12].mxu0 %v1129_v48 }
 0x7db   :  { %2542 = vmatpush3.bf16.msra.mxu0 %v3083_v61  ;;  %2201 = vmatprep.mubr.msk.f32.mxu0 %vm2799_vm0, %v2800_v1 }
 0x7dc   :  { %2543 = vmatprep.subr.bf16.mxu0 %v3398_v0 }
 0x7df   :  { %2545 = vmatpush3.bf16.msra.mxu0 %v3090_v6 }
 0x7e0   :  { %2546 = vmatprep.subr.bf16.mxu0 %v3398_v0 }
 0x7e3   :  { %2548 = vmatpush3.bf16.msra.mxu0 %v3098_v20 }
 0x7e4   :  { %2549 = vmatprep.subr.bf16.mxu0 %v3398_v0 }
 0x7e7   :  { %2551 = vmatpush3.bf16.msra.mxu0 %v3106_v29 }
 0x7e8   :  { %2552 = vmatprep.subr.bf16.mxu0 %v3398_v0 }
 0x7eb   :  { %2554 = vmatpush3.bf16.msra.mxu0 %v3114_v41 }
 0x7ec   :  { %2555 = vmatprep.subr.bf16.mxu0 %v3398_v0 }
 0x7ef   :  { %2557 = vmatpush3.bf16.msra.mxu0 %v3122_v58 }
 0x7f0   :  { %2558 = vmatprep.subr.bf16.mxu0 %v3398_v0 }
 0x7f3   :  { %2560 = vmatpush3.bf16.msra.mxu0 %v3130_v11 }
 0x7f4   :  { %2561 = vmatprep.subr.bf16.mxu0 %v3398_v0 }
 0x7f7   :  { %2563 = vmatpush3.bf16.msra.mxu0 %v3141_v45 }
 0x88d   :  { %v1055_v49 = vpop.f32.mrb[10].mxu0  ;;  %v1125_v53 = vpop.f32.mrb[10].mxu1 }
 0x88e   :  { %v1200_v57 = vadd.f32 %v1125_v53, %v1055_v49  ;;  %v2063_v60 = vpop.f32.mrb[11].mxu0  ;;  %v2098_v63 = vpop.f32.mrb[11].mxu1 }
 0x890   :  { %v1203_v55 = vmul.f32 %v1200_v57, %v1200_v57 }
 0x8ad   :  { %v1196_v4 = vpop.f32.mrb[12].mxu0 }
 0x8ae   :  { %v1201_v8 = vsub.f32 %v1196_v4, %v1055_v49  ;;  %v2133_v14 = vpop.f32.mrb[13].mxu0 }
 0x8b0   :  { %v1202_v17 = vadd.f32 %v1201_v8, %v1125_v53 }
 0x8b2   :  { %v1204_v61 = vmul.f32 %v1202_v17, %v1202_v17 }
 0x8b4   :  { %v1205_v3 = vadd.f32 %v1204_v61, %v1203_v55 }
 0x8b6   :  { %1206 = vmax.xlane.f32.xlu0 %v1205_v3 }
 0x943   :  { %v1207_v6 = vpop.xlane.xlu0 %1206 }
 0x944   :  { %vm1208_vm7 = vcmp.eq.f32.partialorder %v1205_v3, %v1207_v6 }
 0x945   :  { %v1209_v16 = vsel %vm1208_vm7, %v3072_v40, 128 }
 0x946   :  { %v1211_v20 = vshra.s32 %v1209_v16, 16  ;;  %v1210_v29 = vand.u32 65535, %v1209_v16 }
 0x948   :  { %v1213_v28 = vcvt.s32.f32 %v1211_v20  ;;  %v1212_v41 = vcvt.s32.f32 %v1210_v29 }
 0x94a   :  { %1214 = vmin.xlane.f32.xlu1 %v1213_v28 }
 0x9d7   :  { %v1215_v39 = vpop.xlane.xlu1 %1214 }
 0x9d8   :  { %vm1216_vm8 = vcmp.eq.f32.partialorder %v1213_v28, %v1215_v39  ;;  %v1221_v58 = vcvt.f32.s32 %v1215_v39 }
 0x9d9   :  { %v1217_v56 = vsel %vm1216_vm8, %v1212_v41, inf }
 0x9da   :  { %1218 = vmin.xlane.f32.xlu0 %v1217_v56  ;;  %v1222_v11 = vshll.u32 %v1221_v58, 16 }
 0xa67   :  { %v1219_v10 = vpop.xlane.xlu0 %1218 }
 0xa68   :  { %v1220_v35 = vcvt.f32.s32 %v1219_v10 }
 0xa6a   :  { %v1223_v45 = vadd.s32 %v1222_v11, %v1220_v35 }
 0xa6c   :  { %vm1224_vm9 = vcmp.eq.s32.totalorder %v3072_v40, %v1223_v45 }
 0xa6d   :  { %2167 = vmatmul.mubr.msk.f32.vlgmr.msra.gmra.mrb[12].mxu1 %vm1224_vm9, %v2801_v59  ;;  %2202 = vmatmul.mubr.msk.f32.vlgmr.msra.gmra.mrb[14].mxu0 %vm1224_vm9, %v2801_v59  ;;  %v1421_v47 = vsel %vm1224_vm9, 1.0, %v2800_v1 }
 0xa6e   :  { %v1230_v50 = vmul.f32 %v1421_v47, %v1202_v17  ;;  %v1227_v62 = vmul.f32 %v1421_v47, %v1200_v57 }
 0xa70   :  { %1231 = vadd.xlane.f32.xlu0 %v1230_v50  ;;  %1228 = vadd.xlane.f32.xlu1 %v1227_v62 }
 0xafd   :  { %v1232_v21 = vpop.xlane.xlu0 %1231  ;;  %v1229_v27 = vpop.xlane.xlu1 %1228 }
 0xb40   :  { %v1299_v32 = vpop.f32.mrb[12].mxu1  ;;  %v1369_v34 = vpop.f32.mrb[14].mxu0 }
 0xb41   :  { %v1373_v38 = vmul.f32 %v1299_v32, %v1229_v27  ;;  %v1377_v44 = vmul.f32 %v1299_v32, %v1232_v21  ;;  %v1374_v46 = vmul.f32 %v1369_v34, %v1232_v21  ;;  %v1376_v52 = vmul.f32 %v1369_v34, %v1229_v27  ;;  %v2168_v2 = vpop.f32.mrb[13].mxu1  ;;  %v2203_v40 = vpop.f32.mrb[15].mxu0 }
 0xb43   :  { %v1375_v54 = vsub.f32 %v1373_v38, %v1374_v46  ;;  %v1378_v59 = vadd.f32 %v1377_v44, %v1376_v52 }
 0xb45   :  { %v1379_v1 = vsub.f32 %v3295_v42, %v1375_v54  ;;  %v1380_v7 = vsub.f32 %v3298_v43, %v1378_v59 }
 0xb47   :  { %1381 = vst [vmem:[#allocation14] sm:$0xff] %v1379_v1  ;;  %1382 = vst [vmem:[#allocation15] sm:$0xff] %v1380_v7 }
 0xb48   :  { %2744 = shalt.err (!%p2741_p4)
}
 0xb49   :  { %s2745_s22 = scalar_lea.hbm %s3394_s7, 128 }
 0xb4a   :  { %p2746_p5 = scmp.ne.s32.totalorder %s3394_s7, %s2745_s22  ;;  %p2749_p6 = scmp.lt.u32.totalorder %s2745_s22, %s3394_s7 }
 0xb4c   :  { %p2751_p7 = pnand %p2749_p6, %p2746_p5 }
 0xb4e   :  { %2754 = shalt.err (!%p2751_p7)
}
 0xb4f   :  { %1392 = dma.vmem_to_hbm [thread:$0]  %s1390_s28, 128, %s3394_s7, [#allocation4]  }
 0xb50   :  { %s2755_s9 = scalar_lea.vmem %s1400_s0, 128  ;;  %p2760_p9 = scmp.lt.s32.totalorder %s1400_s0, %s1400_s0 }
 0xb51   :  { %p2756_p8 = scmp.ne.s32.totalorder %s1400_s0, %s2755_s9  ;;  %p2761_p10 = scmp.lt.s32.totalorder %s2755_s9, %s2755_s9 }
 0xb53   :  { %p2762_p11 = por %p2761_p10, %p2760_p9 }
 0xb55   :  { %p2763_p12 = pnand %p2762_p11, %p2756_p8 }
 0xb57   :  { %2766 = shalt.err (!%p2763_p12)
}
 0xb58   :  { %s2767_s23 = scalar_lea.hbm %s3395_s8, 128 }
 0xb59   :  { %p2768_p13 = scmp.ne.s32.totalorder %s3395_s8, %s2767_s23  ;;  %p2771_p0 = scmp.lt.u32.totalorder %s2767_s23, %s3395_s8 }
 0xb5b   :  { %p2773_p1 = pnand %p2771_p0, %p2768_p13 }
 0xb5d   :  { %2776 = shalt.err (!%p2773_p1)
}
 0xb5e   :  { %1402 = dma.vmem_to_hbm [thread:$0]  %s1400_s0, 128, %s3395_s8, [#allocation16]  }
 0xb5f   :  { %2785 = dma.done.wait [#allocation4], 128  }
 0xb60   :  { %2786 = vsyncadd [#allocation4], 4294967168 }
 0xb61   :  { %2787 = dma.done.wait [#allocation16], 128  }
 0xb62   :  { %2788 = vsyncadd [#allocation16], 4294967168 }
 0xb63   :  { %1409 = vsyncpa [#allocation3], 1 }
 0xb64   :  { %1410 = vsyncpa [#allocation6], 1 }
 0xb65   :  { %1411 = vsyncpa [#allocation9], 1 }
 0xb66   :  { %1412 = vsyncpa [#allocation12], 1 }
 0xb67   :  { %1413 = vsyncpa [#allocation4], 1 }
 0xb68   :  { %1414 = vsyncpa [#allocation16], 1 }

</bundles_post_ra>
